<compile_context>
chip_gen: v7x
topology: tpu7x:2x2x1
jax: 0.10.0
libtpu: 0.0.40
codegen_flags: <defaults>
</compile_context>

<pallas_src>
import jax
import jax.numpy as jnp
from jax import lax
from jax.experimental import pallas as pl
from jax.experimental.pallas import tpu as pltpu
import numpy as np

# ---- model hyper-parameters (small, consistent with the module) ----
EMBEDDING_DIM = 1
HIDDEN_DIM = 32          # module uses 512; scaled down for a small synthetic run
N_LAYERS = 2
OUTPUT_SIZE = 1
BATCH = 1                # forward() hard-codes batch_size = 1 for the final view
SEQ = 8


def sentiment_lstm_kernel(x_ref, h0_ref, c0_ref,
                          w_ih0_ref, w_hh0_ref, b0_ref,
                          w_ih1_hbm, w_hh1_hbm, b1_ref,
                          fc_w_ref, fc_b_ref,
                          h_n_ref, c_n_ref, fc_out_ref,
                          w_ih1_vmem, w_hh1_vmem, dma_sem):
    L, B, H = h0_ref.shape
    S = x_ref.shape[1]

    # ---- start the layer-1 weight DMAs immediately; they complete behind the
    # layer-0 serial recurrence (only matters at the real H=512, free at H=32).
    cp_ih1 = pltpu.make_async_copy(w_ih1_hbm, w_ih1_vmem, dma_sem.at[0])
    cp_hh1 = pltpu.make_async_copy(w_hh1_hbm, w_hh1_vmem, dma_sem.at[1])
    cp_ih1.start()
    cp_hh1.start()

    # Lazy, wait-once accessors (trace-time memoization): the wait is emitted right
    # before the first consumer of each weight, maximizing DMA/compute overlap.
    _w = {"ih1": None, "hh1": None}

    def get_w_ih1():
        if _w["ih1"] is None:
            cp_ih1.wait()
            _w["ih1"] = w_ih1_vmem[...]
        return _w["ih1"]

    def get_w_hh1():
        if _w["hh1"] is None:
            cp_hh1.wait()
            _w["hh1"] = w_hh1_vmem[...]
        return _w["hh1"]

    # ---- gate nonlinearity (PyTorch gate order: i, f, g, o) ----
    if H % 128 == 0:
        # Lane-aligned gate blocks -> slice them; half the EUP work vs. the where-form.
        def cell(gates, c):
            i_f = jax.nn.sigmoid(gates[:, :2 * H])
            g = jnp.tanh(gates[:, 2 * H:3 * H])
            o = jax.nn.sigmoid(gates[:, 3 * H:])
            c_new = i_f[:, H:] * c + i_f[:, :H] * g
            h_new = o * jnp.tanh(c_new)
            return h_new, c_new
    else:
        # Toy H (=32): slices are not lane-aligned, keep the full-vreg select form.
        lane = lax.broadcasted_iota(jnp.int32, (B, 4 * H), 1)
        g_mask = (lane >= 2 * H) & (lane < 3 * H)

        def cell(gates, c):
            act = jnp.where(g_mask, jnp.tanh(gates), jax.nn.sigmoid(gates))
            i = act[:, 0 * H:1 * H]
            f = act[:, 1 * H:2 * H]
            g = act[:, 2 * H:3 * H]
            o = act[:, 3 * H:4 * H]
            c_new = f * c + i * g
            h_new = o * jnp.tanh(c_new)
            return h_new, c_new

    # Hoist all resident weight loads out of the (unrolled) time loop.
    w_ih0 = w_ih0_ref[...]          # (1, 4H)  (already transposed; VPU path, K=1)
    w_hh0 = w_hh0_ref[...]          # (H, 4H)  (MXU operand; may be bf16)
    b0 = b0_ref[...]                # (1, 4H)  (= b_ih + b_hh)
    b1 = b1_ref[...]                # (1, 4H)
    wdt = w_hh0.dtype               # MXU LHS is cast to the weight dtype (f32 at toy H)

    # ---------------- layer 0 input projection (hoisted) ----------------
    # K == embedding_dim == 1, so it is a single VPU broadcast multiply over all S
    # timesteps with the bias folded in.
    x0_proj = x_ref[...] * w_ih0 + b0                               # (B, S, 4H)

    h0, c0 = h0_ref[0], c0_ref[0]
    h1, c1 = h0_ref[1], c0_ref[1]

    # ---------------- wavefront-interleaved recurrences ----------------
    # Slot t computes: layer-0 step t, layer-1 step t-1, and the layer-1 input
    # projection for step t. The two chains are data-independent within a slot, so
    # the VLIW scheduler can interleave their EUP/MXU work (no scratch round-trip).
    x1_pending = None
    for t in range(S):                                              # unrolled, S=8
        # layer-0 step t
        gates0 = x0_proj[:, t, :] + jnp.dot(h0.astype(wdt), w_hh0,
                                            preferred_element_type=jnp.float32)
        h0, c0 = cell(gates0, c0)

        # layer-1 step t-1 (uses the projection produced in the previous slot;
        # independent of layer-0 step t above)
        if x1_pending is not None:
            gates1 = x1_pending + jnp.dot(h1.astype(wdt), get_w_hh1(),
                                          preferred_element_type=jnp.float32)
            h1, c1 = cell(gates1, c1)

        # layer-1 input projection for step t, as soon as h0_t exists
        x1_pending = jnp.dot(h0.astype(wdt), get_w_ih1(),
                             preferred_element_type=jnp.float32) + b1

    # drain: final layer-1 step
    gates1 = x1_pending + jnp.dot(h1.astype(wdt), get_w_hh1(),
                                  preferred_element_type=jnp.float32)
    h1, c1 = cell(gates1, c1)

    h_n_ref[0] = h0
    h_n_ref[1] = h1
    c_n_ref[0] = c0
    c_n_ref[1] = c1

    # TODO(synk): nn.LSTM applies dropout(0.5) between layers only in training mode;
    # this kernel implements eval/inference semantics (dropout == identity).

    # ---------------- dropout(eval) -> fc -> sigmoid ----------------
    # The caller only consumes view(1, -1)[:, -1], which (batch_size == 1) equals
    # sigmoid(fc(h_last)) of layer 1. N=1 output -> use VPU multiply + lane reduce
    # instead of an (1,H)@(H,1) MXU dot (avoids a vmatmul push/drain for one scalar).
    logits = jnp.sum(h1 * fc_w_ref[...], axis=-1, keepdims=True) + fc_b_ref[...]
    fc_out_ref[...] = jax.nn.sigmoid(logits)                        # (B, 1)


def sentiment_net_forward(x, hidden, params):
    """Pallas implementation of SentimentNet.forward (eval mode)."""
    h0, c0 = hidden
    B, S, E = x.shape
    L, _, H = h0.shape
    assert L == 2 and E == EMBEDDING_DIM and B == 1

    # emulate x.long(): truncate toward zero, then the LSTM consumes it as float
    x = jnp.trunc(x).astype(jnp.float32)

    # At the real H=512 the MXU weight operands go bf16 (halves the HBM->VMEM bytes
    # that dominate this B=1 kernel); activations / gate math stay f32 (v5e-safe).
    use_bf16_weights = H >= 128
    wdtype = jnp.bfloat16 if use_bf16_weights else jnp.float32

    # pre-transpose weights / fold the two bias vectors together (pure glue)
    w_ih0_t = params['w_ih_l0'].T                                   # (1, 4H)  VPU path
    w_hh0_t = params['w_hh_l0'].T.astype(wdtype)                    # (H, 4H)  MXU
    b0 = (params['b_ih_l0'] + params['b_hh_l0']).reshape(1, 4 * H)
    w_ih1_t = params['w_ih_l1'].T.astype(wdtype)                    # (H, 4H)  MXU (ANY->DMA)
    w_hh1_t = params['w_hh_l1'].T.astype(wdtype)                    # (H, 4H)  MXU (ANY->DMA)
    b1 = (params['b_ih_l1'] + params['b_hh_l1']).reshape(1, 4 * H)
    fc_w = params['fc_w'].reshape(1, H)                             # (1, H)   VPU path
    fc_b = params['fc_b'].reshape(1, 1)

    vmem = pl.BlockSpec(memory_space=pltpu.MemorySpace.VMEM)
    anyspace = pl.BlockSpec(memory_space=pl.ANY)   # layer-1 weights: manual DMA overlap

    h_n, c_n, fc_sig = pl.pallas_call(
        sentiment_lstm_kernel,
        out_shape=(
            jax.ShapeDtypeStruct((L, B, H), jnp.float32),
            jax.ShapeDtypeStruct((L, B, H), jnp.float32),
            jax.ShapeDtypeStruct((B, OUTPUT_SIZE), jnp.float32),
        ),
        in_specs=[vmem, vmem, vmem,            # x, h0, c0
                  vmem, vmem, vmem,            # w_ih0, w_hh0, b0
                  anyspace, anyspace, vmem,    # w_ih1 (HBM), w_hh1 (HBM), b1
                  vmem, vmem],                 # fc_w, fc_b
        out_specs=(vmem, vmem, vmem),
        scratch_shapes=[
            pltpu.VMEM((H, 4 * H), wdtype),    # w_ih1 landing buffer
            pltpu.VMEM((H, 4 * H), wdtype),    # w_hh1 landing buffer
            pltpu.SemaphoreType.DMA((2,)),
        ],
        # headroom for scaling hidden_dim toward the real 512 (safe on v5e/v6e/v7x;
        # with bf16 weights the resident footprint stays well under v7x's 64 MiB).
        compiler_params=pltpu.CompilerParams(vmem_limit_bytes=32 * 1024 * 1024),
    )(x, h0, c0, w_ih0_t, w_hh0_t, b0, w_ih1_t, w_hh1_t, b1, fc_w, fc_b)

    # out = sigmoid(fc(...)).view(batch_size=1, -1)[:, -1]  (batch_size == 1)
    out = fc_sig.reshape(1, -1)[:, -1]
    return out, (h_n, c_n)


# ---------------- pure-JAX reference (for correctness check) ----------------
def reference_forward(x, hidden, params):
    h0, c0 = hidden
    x = jnp.trunc(x).astype(jnp.float32)
    B, S, _ = x.shape
    H = h0.shape[-1]
    layer_in = x
    h_ns, c_ns = [], []
    for l in range(N_LAYERS):
        w_ih = params[f'w_ih_l{l}']
        w_hh = params[f'w_hh_l{l}']
        b = params[f'b_ih_l{l}'] + params[f'b_hh_l{l}']
        h, c = h0[l], c0[l]
        outs = []
        for t in range(S):
            xt = layer_in[:, t, :]
            gates = xt @ w_ih.T + h @ w_hh.T + b
            i = jax.nn.sigmoid(gates[:, :H])
            f = jax.nn.sigmoid(gates[:, H:2 * H])
            g = jnp.tanh(gates[:, 2 * H:3 * H])
            o = jax.nn.sigmoid(gates[:, 3 * H:])
            c = f * c + i * g
            h = o * jnp.tanh(c)
            outs.append(h)
        layer_in = jnp.stack(outs, axis=1)
        h_ns.append(h)
        c_ns.append(c)
    flat = layer_in.reshape(-1, H)
    out = jax.nn.sigmoid(flat @ params['fc_w'].T + params['fc_b'])
    out = out.reshape(1, -1)[:, -1]
    return out, (jnp.stack(h_ns), jnp.stack(c_ns))


def init_params(key):
    k = 1.0 / np.sqrt(HIDDEN_DIM)
    keys = jax.random.split(key, 10)
    u = lambda kk, shape: jax.random.uniform(kk, shape, jnp.float32, -k, k)
    H, E = HIDDEN_DIM, EMBEDDING_DIM
    return {
        'w_ih_l0': u(keys[0], (4 * H, E)),
        'w_hh_l0': u(keys[1], (4 * H, H)),
        'b_ih_l0': u(keys[2], (4 * H,)),
        'b_hh_l0': u(keys[3], (4 * H,)),
        'w_ih_l1': u(keys[4], (4 * H, H)),
        'w_hh_l1': u(keys[5], (4 * H, H)),
        'b_ih_l1': u(keys[6], (4 * H,)),
        'b_hh_l1': u(keys[7], (4 * H,)),
        'fc_w':    u(keys[8], (OUTPUT_SIZE, H)),
        'fc_b':    u(keys[9], (OUTPUT_SIZE,)),
    }


if __name__ == "__main__":
    root = jax.random.PRNGKey(0)
    kx, kp = jax.random.split(root)

    params = init_params(kp)
    # token-ish float input; .long() truncation actually changes values here
    x = jax.random.uniform(kx, (BATCH, SEQ, EMBEDDING_DIM), jnp.float32, 0.0, 10.0)
    hidden = (jnp.zeros((N_LAYERS, BATCH, HIDDEN_DIM), jnp.float32),
              jnp.zeros((N_LAYERS, BATCH, HIDDEN_DIM), jnp.float32))

    out, (h_n, c_n) = sentiment_net_forward(x, hidden, params)
    jax.block_until_ready((out, h_n, c_n))

    ref_out, (ref_h, ref_c) = reference_forward(x, hidden, params)
    np.testing.assert_allclose(np.asarray(out), np.asarray(ref_out), atol=1e-5, rtol=1e-5)
    np.testing.assert_allclose(np.asarray(h_n), np.asarray(ref_h), atol=1e-5, rtol=1e-5)
    np.testing.assert_allclose(np.asarray(c_n), np.asarray(ref_c), atol=1e-5, rtol=1e-5)

    print("KERNEL_OK")
</pallas_src>

<mosaic_0001>
module attributes {stable_mosaic.version = 11 : i64} {
  func.func @sentiment_lstm_kernel(%arg0: memref<1x8x1xf32, #tpu.memory_space<vmem>>, %arg1: memref<2x1x32xf32, #tpu.memory_space<vmem>>, %arg2: memref<2x1x32xf32, #tpu.memory_space<vmem>>, %arg3: memref<1x128xf32, #tpu.memory_space<vmem>>, %arg4: memref<32x128xf32, #tpu.memory_space<vmem>>, %arg5: memref<1x128xf32, #tpu.memory_space<vmem>>, %arg6: memref<32x128xf32, #tpu.memory_space<any>>, %arg7: memref<32x128xf32, #tpu.memory_space<any>>, %arg8: memref<1x128xf32, #tpu.memory_space<vmem>>, %arg9: memref<1x32xf32, #tpu.memory_space<vmem>>, %arg10: memref<1x1xf32, #tpu.memory_space<vmem>>, %arg11: memref<2x1x32xf32, #tpu.memory_space<vmem>>, %arg12: memref<2x1x32xf32, #tpu.memory_space<vmem>>, %arg13: memref<1x1xf32, #tpu.memory_space<vmem>>, %arg14: memref<32x128xf32, #tpu.memory_space<vmem>>, %arg15: memref<32x128xf32, #tpu.memory_space<vmem>>, %arg16: memref<2x!tpu.dma_semaphore, #tpu.memory_space<semaphore_mem>>) attributes {dimension_semantics = [], scalar_prefetch = 0 : i64, scratch_operands = 3 : i64, tpu.core_type = #tpu.core_type<tc>} {
    %c0_i32 = arith.constant 0 : i32
    %0 = tpu.memref_slice %arg16[%c0_i32] : memref<2x!tpu.dma_semaphore, #tpu.memory_space<semaphore_mem>> -> memref<1x!tpu.dma_semaphore, #tpu.memory_space<semaphore_mem>>
    %1 = tpu.memref_squeeze %0 : memref<1x!tpu.dma_semaphore, #tpu.memory_space<semaphore_mem>> -> memref<!tpu.dma_semaphore, #tpu.memory_space<semaphore_mem>>
    tpu.enqueue_dma source(%arg6 : memref<32x128xf32, #tpu.memory_space<any>>) target(%arg14 : memref<32x128xf32, #tpu.memory_space<vmem>>) target_semaphore(%1 : memref<!tpu.dma_semaphore, #tpu.memory_space<semaphore_mem>>)
    %c1_i32 = arith.constant 1 : i32
    %2 = tpu.memref_slice %arg16[%c1_i32] : memref<2x!tpu.dma_semaphore, #tpu.memory_space<semaphore_mem>> -> memref<1x!tpu.dma_semaphore, #tpu.memory_space<semaphore_mem>>
    %3 = tpu.memref_squeeze %2 : memref<1x!tpu.dma_semaphore, #tpu.memory_space<semaphore_mem>> -> memref<!tpu.dma_semaphore, #tpu.memory_space<semaphore_mem>>
    tpu.enqueue_dma source(%arg7 : memref<32x128xf32, #tpu.memory_space<any>>) target(%arg15 : memref<32x128xf32, #tpu.memory_space<vmem>>) target_semaphore(%3 : memref<!tpu.dma_semaphore, #tpu.memory_space<semaphore_mem>>)
    %4 = tpu.iota {dimensions = array<i32: 1>} : vector<1x128xi32>
    %c64_i32 = arith.constant 64 : i32
    %5 = vector.broadcast %c64_i32 : i32 to vector<1x128xi32>
    %6 = arith.cmpi sge, %4, %5 : vector<1x128xi32>
    %c96_i32 = arith.constant 96 : i32
    %7 = vector.broadcast %c96_i32 : i32 to vector<1x128xi32>
    %8 = arith.cmpi slt, %4, %7 : vector<1x128xi32>
    %9 = arith.andi %6, %8 : vector<1x128xi1>
    %c0 = arith.constant 0 : index
    %c0_0 = arith.constant 0 : index
    %10 = vector.load %arg3[%c0, %c0_0] : memref<1x128xf32, #tpu.memory_space<vmem>>, vector<1x128xf32>
    %c0_1 = arith.constant 0 : index
    %c0_2 = arith.constant 0 : index
    %11 = vector.load %arg4[%c0_1, %c0_2] : memref<32x128xf32, #tpu.memory_space<vmem>>, vector<32x128xf32>
    %c0_3 = arith.constant 0 : index
    %c0_4 = arith.constant 0 : index
    %12 = vector.load %arg5[%c0_3, %c0_4] : memref<1x128xf32, #tpu.memory_space<vmem>>, vector<1x128xf32>
    %c0_5 = arith.constant 0 : index
    %c0_6 = arith.constant 0 : index
    %13 = vector.load %arg8[%c0_5, %c0_6] : memref<1x128xf32, #tpu.memory_space<vmem>>, vector<1x128xf32>
    %c0_7 = arith.constant 0 : index
    %c0_8 = arith.constant 0 : index
    %c0_9 = arith.constant 0 : index
    %14 = vector.load %arg0[%c0_7, %c0_8, %c0_9] : memref<1x8x1xf32, #tpu.memory_space<vmem>>, vector<1x8x1xf32>
    %15 = vector.shape_cast %10 : vector<1x128xf32> to vector<1x1x128xf32>
    %16 = vector.broadcast %14 : vector<1x8x1xf32> to vector<1x8x128xf32>
    %17 = vector.broadcast %15 : vector<1x1x128xf32> to vector<1x8x128xf32>
    %18 = arith.mulf %16, %17 : vector<1x8x128xf32>
    %19 = vector.shape_cast %12 : vector<1x128xf32> to vector<1x1x128xf32>
    %20 = vector.broadcast %19 : vector<1x1x128xf32> to vector<1x8x128xf32>
    %21 = arith.addf %18, %20 : vector<1x8x128xf32>
    %c0_10 = arith.constant 0 : index
    %c0_11 = arith.constant 0 : index
    %c0_12 = arith.constant 0 : index
    %22 = vector.load %arg1[%c0_10, %c0_11, %c0_12] : memref<2x1x32xf32, #tpu.memory_space<vmem>>, vector<1x1x32xf32>
    %23 = vector.shape_cast %22 : vector<1x1x32xf32> to vector<1x32xf32>
    %c0_13 = arith.constant 0 : index
    %c0_14 = arith.constant 0 : index
    %c0_15 = arith.constant 0 : index
    %24 = vector.load %arg2[%c0_13, %c0_14, %c0_15] : memref<2x1x32xf32, #tpu.memory_space<vmem>>, vector<1x1x32xf32>
    %25 = vector.shape_cast %24 : vector<1x1x32xf32> to vector<1x32xf32>
    %c1 = arith.constant 1 : index
    %c0_16 = arith.constant 0 : index
    %c0_17 = arith.constant 0 : index
    %26 = vector.load %arg1[%c1, %c0_16, %c0_17] : memref<2x1x32xf32, #tpu.memory_space<vmem>>, vector<1x1x32xf32>
    %27 = vector.shape_cast %26 : vector<1x1x32xf32> to vector<1x32xf32>
    %c1_18 = arith.constant 1 : index
    %c0_19 = arith.constant 0 : index
    %c0_20 = arith.constant 0 : index
    %28 = vector.load %arg2[%c1_18, %c0_19, %c0_20] : memref<2x1x32xf32, #tpu.memory_space<vmem>>, vector<1x1x32xf32>
    %29 = vector.shape_cast %28 : vector<1x1x32xf32> to vector<1x32xf32>
    %30 = vector.extract_strided_slice %21 {offsets = [0, 0, 0], sizes = [1, 1, 128], strides = [1, 1, 1]} : vector<1x8x128xf32> to vector<1x1x128xf32>
    %31 = vector.shape_cast %30 : vector<1x1x128xf32> to vector<1x128xf32>
    %cst = arith.constant dense<0.000000e+00> : vector<1x128xf32>
    %32 = tpu.matmul %23, %11, %cst {dimension_numbers = #tpu.dot_dimension_numbers<[1], [0], [0], [1], [0, 0, 1, 1], [], []>} : vector<1x32xf32>, vector<32x128xf32>, vector<1x128xf32> -> vector<1x128xf32>
    %33 = arith.addf %31, %32 : vector<1x128xf32>
    %34 = math.tanh %33 : vector<1x128xf32>
    %35 = arith.negf %33 : vector<1x128xf32>
    %36 = math.exp %35 : vector<1x128xf32>
    %cst_21 = arith.constant 1.000000e+00 : f32
    %37 = vector.broadcast %cst_21 : f32 to vector<1x128xf32>
    %38 = arith.addf %37, %36 : vector<1x128xf32>
    %39 = arith.divf %37, %38 : vector<1x128xf32>
    %40 = arith.select %9, %34, %39 : vector<1x128xi1>, vector<1x128xf32>
    %41 = vector.extract_strided_slice %40 {offsets = [0, 0], sizes = [1, 32], strides = [1, 1]} : vector<1x128xf32> to vector<1x32xf32>
    %42 = vector.extract_strided_slice %40 {offsets = [0, 32], sizes = [1, 32], strides = [1, 1]} : vector<1x128xf32> to vector<1x32xf32>
    %43 = vector.extract_strided_slice %40 {offsets = [0, 64], sizes = [1, 32], strides = [1, 1]} : vector<1x128xf32> to vector<1x32xf32>
    %44 = vector.extract_strided_slice %40 {offsets = [0, 96], sizes = [1, 32], strides = [1, 1]} : vector<1x128xf32> to vector<1x32xf32>
    %45 = arith.mulf %42, %25 : vector<1x32xf32>
    %46 = arith.mulf %41, %43 : vector<1x32xf32>
    %47 = arith.addf %45, %46 : vector<1x32xf32>
    %48 = math.tanh %47 : vector<1x32xf32>
    %49 = arith.mulf %44, %48 : vector<1x32xf32>
    %c0_i32_22 = arith.constant 0 : i32
    %50 = tpu.memref_slice %arg16[%c0_i32_22] : memref<2x!tpu.dma_semaphore, #tpu.memory_space<semaphore_mem>> -> memref<1x!tpu.dma_semaphore, #tpu.memory_space<semaphore_mem>>
    %51 = tpu.memref_squeeze %50 : memref<1x!tpu.dma_semaphore, #tpu.memory_space<semaphore_mem>> -> memref<!tpu.dma_semaphore, #tpu.memory_space<semaphore_mem>>
    tpu.wait_dma2 semaphore(%51 : memref<!tpu.dma_semaphore, #tpu.memory_space<semaphore_mem>>) src(%arg6 : memref<32x128xf32, #tpu.memory_space<any>>) dst(%arg14 : memref<32x128xf32, #tpu.memory_space<vmem>>)
    %c0_23 = arith.constant 0 : index
    %c0_24 = arith.constant 0 : index
    %52 = vector.load %arg14[%c0_23, %c0_24] : memref<32x128xf32, #tpu.memory_space<vmem>>, vector<32x128xf32>
    %cst_25 = arith.constant dense<0.000000e+00> : vector<1x128xf32>
    %53 = tpu.matmul %49, %52, %cst_25 {dimension_numbers = #tpu.dot_dimension_numbers<[1], [0], [0], [1], [0, 0, 1, 1], [], []>} : vector<1x32xf32>, vector<32x128xf32>, vector<1x128xf32> -> vector<1x128xf32>
    %54 = arith.addf %53, %13 : vector<1x128xf32>
    %55 = vector.extract_strided_slice %21 {offsets = [0, 1, 0], sizes = [1, 1, 128], strides = [1, 1, 1]} : vector<1x8x128xf32> to vector<1x1x128xf32>
    %56 = vector.shape_cast %55 : vector<1x1x128xf32> to vector<1x128xf32>
    %cst_26 = arith.constant dense<0.000000e+00> : vector<1x128xf32>
    %57 = tpu.matmul %49, %11, %cst_26 {dimension_numbers = #tpu.dot_dimension_numbers<[1], [0], [0], [1], [0, 0, 1, 1], [], []>} : vector<1x32xf32>, vector<32x128xf32>, vector<1x128xf32> -> vector<1x128xf32>
    %58 = arith.addf %56, %57 : vector<1x128xf32>
    %59 = math.tanh %58 : vector<1x128xf32>
    %60 = arith.negf %58 : vector<1x128xf32>
    %61 = math.exp %60 : vector<1x128xf32>
    %cst_27 = arith.constant 1.000000e+00 : f32
    %62 = vector.broadcast %cst_27 : f32 to vector<1x128xf32>
    %63 = arith.addf %62, %61 : vector<1x128xf32>
    %64 = arith.divf %62, %63 : vector<1x128xf32>
    %65 = arith.select %9, %59, %64 : vector<1x128xi1>, vector<1x128xf32>
    %66 = vector.extract_strided_slice %65 {offsets = [0, 0], sizes = [1, 32], strides = [1, 1]} : vector<1x128xf32> to vector<1x32xf32>
    %67 = vector.extract_strided_slice %65 {offsets = [0, 32], sizes = [1, 32], strides = [1, 1]} : vector<1x128xf32> to vector<1x32xf32>
    %68 = vector.extract_strided_slice %65 {offsets = [0, 64], sizes = [1, 32], strides = [1, 1]} : vector<1x128xf32> to vector<1x32xf32>
    %69 = vector.extract_strided_slice %65 {offsets = [0, 96], sizes = [1, 32], strides = [1, 1]} : vector<1x128xf32> to vector<1x32xf32>
    %70 = arith.mulf %67, %47 : vector<1x32xf32>
    %71 = arith.mulf %66, %68 : vector<1x32xf32>
    %72 = arith.addf %70, %71 : vector<1x32xf32>
    %73 = math.tanh %72 : vector<1x32xf32>
    %74 = arith.mulf %69, %73 : vector<1x32xf32>
    %c1_i32_28 = arith.constant 1 : i32
    %75 = tpu.memref_slice %arg16[%c1_i32_28] : memref<2x!tpu.dma_semaphore, #tpu.memory_space<semaphore_mem>> -> memref<1x!tpu.dma_semaphore, #tpu.memory_space<semaphore_mem>>
    %76 = tpu.memref_squeeze %75 : memref<1x!tpu.dma_semaphore, #tpu.memory_space<semaphore_mem>> -> memref<!tpu.dma_semaphore, #tpu.memory_space<semaphore_mem>>
    tpu.wait_dma2 semaphore(%76 : memref<!tpu.dma_semaphore, #tpu.memory_space<semaphore_mem>>) src(%arg7 : memref<32x128xf32, #tpu.memory_space<any>>) dst(%arg15 : memref<32x128xf32, #tpu.memory_space<vmem>>)
    %c0_29 = arith.constant 0 : index
    %c0_30 = arith.constant 0 : index
    %77 = vector.load %arg15[%c0_29, %c0_30] : memref<32x128xf32, #tpu.memory_space<vmem>>, vector<32x128xf32>
    %cst_31 = arith.constant dense<0.000000e+00> : vector<1x128xf32>
    %78 = tpu.matmul %27, %77, %cst_31 {dimension_numbers = #tpu.dot_dimension_numbers<[1], [0], [0], [1], [0, 0, 1, 1], [], []>} : vector<1x32xf32>, vector<32x128xf32>, vector<1x128xf32> -> vector<1x128xf32>
    %79 = arith.addf %54, %78 : vector<1x128xf32>
    %80 = math.tanh %79 : vector<1x128xf32>
    %81 = arith.negf %79 : vector<1x128xf32>
    %82 = math.exp %81 : vector<1x128xf32>
    %cst_32 = arith.constant 1.000000e+00 : f32
    %83 = vector.broadcast %cst_32 : f32 to vector<1x128xf32>
    %84 = arith.addf %83, %82 : vector<1x128xf32>
    %85 = arith.divf %83, %84 : vector<1x128xf32>
    %86 = arith.select %9, %80, %85 : vector<1x128xi1>, vector<1x128xf32>
    %87 = vector.extract_strided_slice %86 {offsets = [0, 0], sizes = [1, 32], strides = [1, 1]} : vector<1x128xf32> to vector<1x32xf32>
    %88 = vector.extract_strided_slice %86 {offsets = [0, 32], sizes = [1, 32], strides = [1, 1]} : vector<1x128xf32> to vector<1x32xf32>
    %89 = vector.extract_strided_slice %86 {offsets = [0, 64], sizes = [1, 32], strides = [1, 1]} : vector<1x128xf32> to vector<1x32xf32>
    %90 = vector.extract_strided_slice %86 {offsets = [0, 96], sizes = [1, 32], strides = [1, 1]} : vector<1x128xf32> to vector<1x32xf32>
    %91 = arith.mulf %88, %29 : vector<1x32xf32>
    %92 = arith.mulf %87, %89 : vector<1x32xf32>
    %93 = arith.addf %91, %92 : vector<1x32xf32>
    %94 = math.tanh %93 : vector<1x32xf32>
    %95 = arith.mulf %90, %94 : vector<1x32xf32>
    %cst_33 = arith.constant dense<0.000000e+00> : vector<1x128xf32>
    %96 = tpu.matmul %74, %52, %cst_33 {dimension_numbers = #tpu.dot_dimension_numbers<[1], [0], [0], [1], [0, 0, 1, 1], [], []>} : vector<1x32xf32>, vector<32x128xf32>, vector<1x128xf32> -> vector<1x128xf32>
    %97 = arith.addf %96, %13 : vector<1x128xf32>
    %98 = vector.extract_strided_slice %21 {offsets = [0, 2, 0], sizes = [1, 1, 128], strides = [1, 1, 1]} : vector<1x8x128xf32> to vector<1x1x128xf32>
    %99 = vector.shape_cast %98 : vector<1x1x128xf32> to vector<1x128xf32>
    %cst_34 = arith.constant dense<0.000000e+00> : vector<1x128xf32>
    %100 = tpu.matmul %74, %11, %cst_34 {dimension_numbers = #tpu.dot_dimension_numbers<[1], [0], [0], [1], [0, 0, 1, 1], [], []>} : vector<1x32xf32>, vector<32x128xf32>, vector<1x128xf32> -> vector<1x128xf32>
    %101 = arith.addf %99, %100 : vector<1x128xf32>
    %102 = math.tanh %101 : vector<1x128xf32>
    %103 = arith.negf %101 : vector<1x128xf32>
    %104 = math.exp %103 : vector<1x128xf32>
    %cst_35 = arith.constant 1.000000e+00 : f32
    %105 = vector.broadcast %cst_35 : f32 to vector<1x128xf32>
    %106 = arith.addf %105, %104 : vector<1x128xf32>
    %107 = arith.divf %105, %106 : vector<1x128xf32>
    %108 = arith.select %9, %102, %107 : vector<1x128xi1>, vector<1x128xf32>
    %109 = vector.extract_strided_slice %108 {offsets = [0, 0], sizes = [1, 32], strides = [1, 1]} : vector<1x128xf32> to vector<1x32xf32>
    %110 = vector.extract_strided_slice %108 {offsets = [0, 32], sizes = [1, 32], strides = [1, 1]} : vector<1x128xf32> to vector<1x32xf32>
    %111 = vector.extract_strided_slice %108 {offsets = [0, 64], sizes = [1, 32], strides = [1, 1]} : vector<1x128xf32> to vector<1x32xf32>
    %112 = vector.extract_strided_slice %108 {offsets = [0, 96], sizes = [1, 32], strides = [1, 1]} : vector<1x128xf32> to vector<1x32xf32>
    %113 = arith.mulf %110, %72 : vector<1x32xf32>
    %114 = arith.mulf %109, %111 : vector<1x32xf32>
    %115 = arith.addf %113, %114 : vector<1x32xf32>
    %116 = math.tanh %115 : vector<1x32xf32>
    %117 = arith.mulf %112, %116 : vector<1x32xf32>
    %cst_36 = arith.constant dense<0.000000e+00> : vector<1x128xf32>
    %118 = tpu.matmul %95, %77, %cst_36 {dimension_numbers = #tpu.dot_dimension_numbers<[1], [0], [0], [1], [0, 0, 1, 1], [], []>} : vector<1x32xf32>, vector<32x128xf32>, vector<1x128xf32> -> vector<1x128xf32>
    %119 = arith.addf %97, %118 : vector<1x128xf32>
    %120 = math.tanh %119 : vector<1x128xf32>
    %121 = arith.negf %119 : vector<1x128xf32>
    %122 = math.exp %121 : vector<1x128xf32>
    %cst_37 = arith.constant 1.000000e+00 : f32
    %123 = vector.broadcast %cst_37 : f32 to vector<1x128xf32>
    %124 = arith.addf %123, %122 : vector<1x128xf32>
    %125 = arith.divf %123, %124 : vector<1x128xf32>
    %126 = arith.select %9, %120, %125 : vector<1x128xi1>, vector<1x128xf32>
    %127 = vector.extract_strided_slice %126 {offsets = [0, 0], sizes = [1, 32], strides = [1, 1]} : vector<1x128xf32> to vector<1x32xf32>
    %128 = vector.extract_strided_slice %126 {offsets = [0, 32], sizes = [1, 32], strides = [1, 1]} : vector<1x128xf32> to vector<1x32xf32>
    %129 = vector.extract_strided_slice %126 {offsets = [0, 64], sizes = [1, 32], strides = [1, 1]} : vector<1x128xf32> to vector<1x32xf32>
    %130 = vector.extract_strided_slice %126 {offsets = [0, 96], sizes = [1, 32], strides = [1, 1]} : vector<1x128xf32> to vector<1x32xf32>
    %131 = arith.mulf %128, %93 : vector<1x32xf32>
    %132 = arith.mulf %127, %129 : vector<1x32xf32>
    %133 = arith.addf %131, %132 : vector<1x32xf32>
    %134 = math.tanh %133 : vector<1x32xf32>
    %135 = arith.mulf %130, %134 : vector<1x32xf32>
    %cst_38 = arith.constant dense<0.000000e+00> : vector<1x128xf32>
    %136 = tpu.matmul %117, %52, %cst_38 {dimension_numbers = #tpu.dot_dimension_numbers<[1], [0], [0], [1], [0, 0, 1, 1], [], []>} : vector<1x32xf32>, vector<32x128xf32>, vector<1x128xf32> -> vector<1x128xf32>
    %137 = arith.addf %136, %13 : vector<1x128xf32>
    %138 = vector.extract_strided_slice %21 {offsets = [0, 3, 0], sizes = [1, 1, 128], strides = [1, 1, 1]} : vector<1x8x128xf32> to vector<1x1x128xf32>
    %139 = vector.shape_cast %138 : vector<1x1x128xf32> to vector<1x128xf32>
    %cst_39 = arith.constant dense<0.000000e+00> : vector<1x128xf32>
    %140 = tpu.matmul %117, %11, %cst_39 {dimension_numbers = #tpu.dot_dimension_numbers<[1], [0], [0], [1], [0, 0, 1, 1], [], []>} : vector<1x32xf32>, vector<32x128xf32>, vector<1x128xf32> -> vector<1x128xf32>
    %141 = arith.addf %139, %140 : vector<1x128xf32>
    %142 = math.tanh %141 : vector<1x128xf32>
    %143 = arith.negf %141 : vector<1x128xf32>
    %144 = math.exp %143 : vector<1x128xf32>
    %cst_40 = arith.constant 1.000000e+00 : f32
    %145 = vector.broadcast %cst_40 : f32 to vector<1x128xf32>
    %146 = arith.addf %145, %144 : vector<1x128xf32>
    %147 = arith.divf %145, %146 : vector<1x128xf32>
    %148 = arith.select %9, %142, %147 : vector<1x128xi1>, vector<1x128xf32>
    %149 = vector.extract_strided_slice %148 {offsets = [0, 0], sizes = [1, 32], strides = [1, 1]} : vector<1x128xf32> to vector<1x32xf32>
    %150 = vector.extract_strided_slice %148 {offsets = [0, 32], sizes = [1, 32], strides = [1, 1]} : vector<1x128xf32> to vector<1x32xf32>
    %151 = vector.extract_strided_slice %148 {offsets = [0, 64], sizes = [1, 32], strides = [1, 1]} : vector<1x128xf32> to vector<1x32xf32>
    %152 = vector.extract_strided_slice %148 {offsets = [0, 96], sizes = [1, 32], strides = [1, 1]} : vector<1x128xf32> to vector<1x32xf32>
    %153 = arith.mulf %150, %115 : vector<1x32xf32>
    %154 = arith.mulf %149, %151 : vector<1x32xf32>
    %155 = arith.addf %153, %154 : vector<1x32xf32>
    %156 = math.tanh %155 : vector<1x32xf32>
    %157 = arith.mulf %152, %156 : vector<1x32xf32>
    %cst_41 = arith.constant dense<0.000000e+00> : vector<1x128xf32>
    %158 = tpu.matmul %135, %77, %cst_41 {dimension_numbers = #tpu.dot_dimension_numbers<[1], [0], [0], [1], [0, 0, 1, 1], [], []>} : vector<1x32xf32>, vector<32x128xf32>, vector<1x128xf32> -> vector<1x128xf32>
    %159 = arith.addf %137, %158 : vector<1x128xf32>
    %160 = math.tanh %159 : vector<1x128xf32>
    %161 = arith.negf %159 : vector<1x128xf32>
    %162 = math.exp %161 : vector<1x128xf32>
    %cst_42 = arith.constant 1.000000e+00 : f32
    %163 = vector.broadcast %cst_42 : f32 to vector<1x128xf32>
    %164 = arith.addf %163, %162 : vector<1x128xf32>
    %165 = arith.divf %163, %164 : vector<1x128xf32>
    %166 = arith.select %9, %160, %165 : vector<1x128xi1>, vector<1x128xf32>
    %167 = vector.extract_strided_slice %166 {offsets = [0, 0], sizes = [1, 32], strides = [1, 1]} : vector<1x128xf32> to vector<1x32xf32>
    %168 = vector.extract_strided_slice %166 {offsets = [0, 32], sizes = [1, 32], strides = [1, 1]} : vector<1x128xf32> to vector<1x32xf32>
    %169 = vector.extract_strided_slice %166 {offsets = [0, 64], sizes = [1, 32], strides = [1, 1]} : vector<1x128xf32> to vector<1x32xf32>
    %170 = vector.extract_strided_slice %166 {offsets = [0, 96], sizes = [1, 32], strides = [1, 1]} : vector<1x128xf32> to vector<1x32xf32>
    %171 = arith.mulf %168, %133 : vector<1x32xf32>
    %172 = arith.mulf %167, %169 : vector<1x32xf32>
    %173 = arith.addf %171, %172 : vector<1x32xf32>
    %174 = math.tanh %173 : vector<1x32xf32>
    %175 = arith.mulf %170, %174 : vector<1x32xf32>
    %cst_43 = arith.constant dense<0.000000e+00> : vector<1x128xf32>
    %176 = tpu.matmul %157, %52, %cst_43 {dimension_numbers = #tpu.dot_dimension_numbers<[1], [0], [0], [1], [0, 0, 1, 1], [], []>} : vector<1x32xf32>, vector<32x128xf32>, vector<1x128xf32> -> vector<1x128xf32>
    %177 = arith.addf %176, %13 : vector<1x128xf32>
    %178 = vector.extract_strided_slice %21 {offsets = [0, 4, 0], sizes = [1, 1, 128], strides = [1, 1, 1]} : vector<1x8x128xf32> to vector<1x1x128xf32>
    %179 = vector.shape_cast %178 : vector<1x1x128xf32> to vector<1x128xf32>
    %cst_44 = arith.constant dense<0.000000e+00> : vector<1x128xf32>
    %180 = tpu.matmul %157, %11, %cst_44 {dimension_numbers = #tpu.dot_dimension_numbers<[1], [0], [0], [1], [0, 0, 1, 1], [], []>} : vector<1x32xf32>, vector<32x128xf32>, vector<1x128xf32> -> vector<1x128xf32>
    %181 = arith.addf %179, %180 : vector<1x128xf32>
    %182 = math.tanh %181 : vector<1x128xf32>
    %183 = arith.negf %181 : vector<1x128xf32>
    %184 = math.exp %183 : vector<1x128xf32>
    %cst_45 = arith.constant 1.000000e+00 : f32
    %185 = vector.broadcast %cst_45 : f32 to vector<1x128xf32>
    %186 = arith.addf %185, %184 : vector<1x128xf32>
    %187 = arith.divf %185, %186 : vector<1x128xf32>
    %188 = arith.select %9, %182, %187 : vector<1x128xi1>, vector<1x128xf32>
    %189 = vector.extract_strided_slice %188 {offsets = [0, 0], sizes = [1, 32], strides = [1, 1]} : vector<1x128xf32> to vector<1x32xf32>
    %190 = vector.extract_strided_slice %188 {offsets = [0, 32], sizes = [1, 32], strides = [1, 1]} : vector<1x128xf32> to vector<1x32xf32>
    %191 = vector.extract_strided_slice %188 {offsets = [0, 64], sizes = [1, 32], strides = [1, 1]} : vector<1x128xf32> to vector<1x32xf32>
    %192 = vector.extract_strided_slice %188 {offsets = [0, 96], sizes = [1, 32], strides = [1, 1]} : vector<1x128xf32> to vector<1x32xf32>
    %193 = arith.mulf %190, %155 : vector<1x32xf32>
    %194 = arith.mulf %189, %191 : vector<1x32xf32>
    %195 = arith.addf %193, %194 : vector<1x32xf32>
    %196 = math.tanh %195 : vector<1x32xf32>
    %197 = arith.mulf %192, %196 : vector<1x32xf32>
    %cst_46 = arith.constant dense<0.000000e+00> : vector<1x128xf32>
    %198 = tpu.matmul %175, %77, %cst_46 {dimension_numbers = #tpu.dot_dimension_numbers<[1], [0], [0], [1], [0, 0, 1, 1], [], []>} : vector<1x32xf32>, vector<32x128xf32>, vector<1x128xf32> -> vector<1x128xf32>
    %199 = arith.addf %177, %198 : vector<1x128xf32>
    %200 = math.tanh %199 : vector<1x128xf32>
    %201 = arith.negf %199 : vector<1x128xf32>
    %202 = math.exp %201 : vector<1x128xf32>
    %cst_47 = arith.constant 1.000000e+00 : f32
    %203 = vector.broadcast %cst_47 : f32 to vector<1x128xf32>
    %204 = arith.addf %203, %202 : vector<1x128xf32>
    %205 = arith.divf %203, %204 : vector<1x128xf32>
    %206 = arith.select %9, %200, %205 : vector<1x128xi1>, vector<1x128xf32>
    %207 = vector.extract_strided_slice %206 {offsets = [0, 0], sizes = [1, 32], strides = [1, 1]} : vector<1x128xf32> to vector<1x32xf32>
    %208 = vector.extract_strided_slice %206 {offsets = [0, 32], sizes = [1, 32], strides = [1, 1]} : vector<1x128xf32> to vector<1x32xf32>
    %209 = vector.extract_strided_slice %206 {offsets = [0, 64], sizes = [1, 32], strides = [1, 1]} : vector<1x128xf32> to vector<1x32xf32>
    %210 = vector.extract_strided_slice %206 {offsets = [0, 96], sizes = [1, 32], strides = [1, 1]} : vector<1x128xf32> to vector<1x32xf32>
    %211 = arith.mulf %208, %173 : vector<1x32xf32>
    %212 = arith.mulf %207, %209 : vector<1x32xf32>
    %213 = arith.addf %211, %212 : vector<1x32xf32>
    %214 = math.tanh %213 : vector<1x32xf32>
    %215 = arith.mulf %210, %214 : vector<1x32xf32>
    %cst_48 = arith.constant dense<0.000000e+00> : vector<1x128xf32>
    %216 = tpu.matmul %197, %52, %cst_48 {dimension_numbers = #tpu.dot_dimension_numbers<[1], [0], [0], [1], [0, 0, 1, 1], [], []>} : vector<1x32xf32>, vector<32x128xf32>, vector<1x128xf32> -> vector<1x128xf32>
    %217 = arith.addf %216, %13 : vector<1x128xf32>
    %218 = vector.extract_strided_slice %21 {offsets = [0, 5, 0], sizes = [1, 1, 128], strides = [1, 1, 1]} : vector<1x8x128xf32> to vector<1x1x128xf32>
    %219 = vector.shape_cast %218 : vector<1x1x128xf32> to vector<1x128xf32>
    %cst_49 = arith.constant dense<0.000000e+00> : vector<1x128xf32>
    %220 = tpu.matmul %197, %11, %cst_49 {dimension_numbers = #tpu.dot_dimension_numbers<[1], [0], [0], [1], [0, 0, 1, 1], [], []>} : vector<1x32xf32>, vector<32x128xf32>, vector<1x128xf32> -> vector<1x128xf32>
    %221 = arith.addf %219, %220 : vector<1x128xf32>
    %222 = math.tanh %221 : vector<1x128xf32>
    %223 = arith.negf %221 : vector<1x128xf32>
    %224 = math.exp %223 : vector<1x128xf32>
    %cst_50 = arith.constant 1.000000e+00 : f32
    %225 = vector.broadcast %cst_50 : f32 to vector<1x128xf32>
    %226 = arith.addf %225, %224 : vector<1x128xf32>
    %227 = arith.divf %225, %226 : vector<1x128xf32>
    %228 = arith.select %9, %222, %227 : vector<1x128xi1>, vector<1x128xf32>
    %229 = vector.extract_strided_slice %228 {offsets = [0, 0], sizes = [1, 32], strides = [1, 1]} : vector<1x128xf32> to vector<1x32xf32>
    %230 = vector.extract_strided_slice %228 {offsets = [0, 32], sizes = [1, 32], strides = [1, 1]} : vector<1x128xf32> to vector<1x32xf32>
    %231 = vector.extract_strided_slice %228 {offsets = [0, 64], sizes = [1, 32], strides = [1, 1]} : vector<1x128xf32> to vector<1x32xf32>
    %232 = vector.extract_strided_slice %228 {offsets = [0, 96], sizes = [1, 32], strides = [1, 1]} : vector<1x128xf32> to vector<1x32xf32>
    %233 = arith.mulf %230, %195 : vector<1x32xf32>
    %234 = arith.mulf %229, %231 : vector<1x32xf32>
    %235 = arith.addf %233, %234 : vector<1x32xf32>
    %236 = math.tanh %235 : vector<1x32xf32>
    %237 = arith.mulf %232, %236 : vector<1x32xf32>
    %cst_51 = arith.constant dense<0.000000e+00> : vector<1x128xf32>
    %238 = tpu.matmul %215, %77, %cst_51 {dimension_numbers = #tpu.dot_dimension_numbers<[1], [0], [0], [1], [0, 0, 1, 1], [], []>} : vector<1x32xf32>, vector<32x128xf32>, vector<1x128xf32> -> vector<1x128xf32>
    %239 = arith.addf %217, %238 : vector<1x128xf32>
    %240 = math.tanh %239 : vector<1x128xf32>
    %241 = arith.negf %239 : vector<1x128xf32>
    %242 = math.exp %241 : vector<1x128xf32>
    %cst_52 = arith.constant 1.000000e+00 : f32
    %243 = vector.broadcast %cst_52 : f32 to vector<1x128xf32>
    %244 = arith.addf %243, %242 : vector<1x128xf32>
    %245 = arith.divf %243, %244 : vector<1x128xf32>
    %246 = arith.select %9, %240, %245 : vector<1x128xi1>, vector<1x128xf32>
    %247 = vector.extract_strided_slice %246 {offsets = [0, 0], sizes = [1, 32], strides = [1, 1]} : vector<1x128xf32> to vector<1x32xf32>
    %248 = vector.extract_strided_slice %246 {offsets = [0, 32], sizes = [1, 32], strides = [1, 1]} : vector<1x128xf32> to vector<1x32xf32>
    %249 = vector.extract_strided_slice %246 {offsets = [0, 64], sizes = [1, 32], strides = [1, 1]} : vector<1x128xf32> to vector<1x32xf32>
    %250 = vector.extract_strided_slice %246 {offsets = [0, 96], sizes = [1, 32], strides = [1, 1]} : vector<1x128xf32> to vector<1x32xf32>
    %251 = arith.mulf %248, %213 : vector<1x32xf32>
    %252 = arith.mulf %247, %249 : vector<1x32xf32>
    %253 = arith.addf %251, %252 : vector<1x32xf32>
    %254 = math.tanh %253 : vector<1x32xf32>
    %255 = arith.mulf %250, %254 : vector<1x32xf32>
    %cst_53 = arith.constant dense<0.000000e+00> : vector<1x128xf32>
    %256 = tpu.matmul %237, %52, %cst_53 {dimension_numbers = #tpu.dot_dimension_numbers<[1], [0], [0], [1], [0, 0, 1, 1], [], []>} : vector<1x32xf32>, vector<32x128xf32>, vector<1x128xf32> -> vector<1x128xf32>
    %257 = arith.addf %256, %13 : vector<1x128xf32>
    %258 = vector.extract_strided_slice %21 {offsets = [0, 6, 0], sizes = [1, 1, 128], strides = [1, 1, 1]} : vector<1x8x128xf32> to vector<1x1x128xf32>
    %259 = vector.shape_cast %258 : vector<1x1x128xf32> to vector<1x128xf32>
    %cst_54 = arith.constant dense<0.000000e+00> : vector<1x128xf32>
    %260 = tpu.matmul %237, %11, %cst_54 {dimension_numbers = #tpu.dot_dimension_numbers<[1], [0], [0], [1], [0, 0, 1, 1], [], []>} : vector<1x32xf32>, vector<32x128xf32>, vector<1x128xf32> -> vector<1x128xf32>
    %261 = arith.addf %259, %260 : vector<1x128xf32>
    %262 = math.tanh %261 : vector<1x128xf32>
    %263 = arith.negf %261 : vector<1x128xf32>
    %264 = math.exp %263 : vector<1x128xf32>
    %cst_55 = arith.constant 1.000000e+00 : f32
    %265 = vector.broadcast %cst_55 : f32 to vector<1x128xf32>
    %266 = arith.addf %265, %264 : vector<1x128xf32>
    %267 = arith.divf %265, %266 : vector<1x128xf32>
    %268 = arith.select %9, %262, %267 : vector<1x128xi1>, vector<1x128xf32>
    %269 = vector.extract_strided_slice %268 {offsets = [0, 0], sizes = [1, 32], strides = [1, 1]} : vector<1x128xf32> to vector<1x32xf32>
    %270 = vector.extract_strided_slice %268 {offsets = [0, 32], sizes = [1, 32], strides = [1, 1]} : vector<1x128xf32> to vector<1x32xf32>
    %271 = vector.extract_strided_slice %268 {offsets = [0, 64], sizes = [1, 32], strides = [1, 1]} : vector<1x128xf32> to vector<1x32xf32>
    %272 = vector.extract_strided_slice %268 {offsets = [0, 96], sizes = [1, 32], strides = [1, 1]} : vector<1x128xf32> to vector<1x32xf32>
    %273 = arith.mulf %270, %235 : vector<1x32xf32>
    %274 = arith.mulf %269, %271 : vector<1x32xf32>
    %275 = arith.addf %273, %274 : vector<1x32xf32>
    %276 = math.tanh %275 : vector<1x32xf32>
    %277 = arith.mulf %272, %276 : vector<1x32xf32>
    %cst_56 = arith.constant dense<0.000000e+00> : vector<1x128xf32>
    %278 = tpu.matmul %255, %77, %cst_56 {dimension_numbers = #tpu.dot_dimension_numbers<[1], [0], [0], [1], [0, 0, 1, 1], [], []>} : vector<1x32xf32>, vector<32x128xf32>, vector<1x128xf32> -> vector<1x128xf32>
    %279 = arith.addf %257, %278 : vector<1x128xf32>
    %280 = math.tanh %279 : vector<1x128xf32>
    %281 = arith.negf %279 : vector<1x128xf32>
    %282 = math.exp %281 : vector<1x128xf32>
    %cst_57 = arith.constant 1.000000e+00 : f32
    %283 = vector.broadcast %cst_57 : f32 to vector<1x128xf32>
    %284 = arith.addf %283, %282 : vector<1x128xf32>
    %285 = arith.divf %283, %284 : vector<1x128xf32>
    %286 = arith.select %9, %280, %285 : vector<1x128xi1>, vector<1x128xf32>
    %287 = vector.extract_strided_slice %286 {offsets = [0, 0], sizes = [1, 32], strides = [1, 1]} : vector<1x128xf32> to vector<1x32xf32>
    %288 = vector.extract_strided_slice %286 {offsets = [0, 32], sizes = [1, 32], strides = [1, 1]} : vector<1x128xf32> to vector<1x32xf32>
    %289 = vector.extract_strided_slice %286 {offsets = [0, 64], sizes = [1, 32], strides = [1, 1]} : vector<1x128xf32> to vector<1x32xf32>
    %290 = vector.extract_strided_slice %286 {offsets = [0, 96], sizes = [1, 32], strides = [1, 1]} : vector<1x128xf32> to vector<1x32xf32>
    %291 = arith.mulf %288, %253 : vector<1x32xf32>
    %292 = arith.mulf %287, %289 : vector<1x32xf32>
    %293 = arith.addf %291, %292 : vector<1x32xf32>
    %294 = math.tanh %293 : vector<1x32xf32>
    %295 = arith.mulf %290, %294 : vector<1x32xf32>
    %cst_58 = arith.constant dense<0.000000e+00> : vector<1x128xf32>
    %296 = tpu.matmul %277, %52, %cst_58 {dimension_numbers = #tpu.dot_dimension_numbers<[1], [0], [0], [1], [0, 0, 1, 1], [], []>} : vector<1x32xf32>, vector<32x128xf32>, vector<1x128xf32> -> vector<1x128xf32>
    %297 = arith.addf %296, %13 : vector<1x128xf32>
    %298 = vector.extract_strided_slice %21 {offsets = [0, 7, 0], sizes = [1, 1, 128], strides = [1, 1, 1]} : vector<1x8x128xf32> to vector<1x1x128xf32>
    %299 = vector.shape_cast %298 : vector<1x1x128xf32> to vector<1x128xf32>
    %cst_59 = arith.constant dense<0.000000e+00> : vector<1x128xf32>
    %300 = tpu.matmul %277, %11, %cst_59 {dimension_numbers = #tpu.dot_dimension_numbers<[1], [0], [0], [1], [0, 0, 1, 1], [], []>} : vector<1x32xf32>, vector<32x128xf32>, vector<1x128xf32> -> vector<1x128xf32>
    %301 = arith.addf %299, %300 : vector<1x128xf32>
    %302 = math.tanh %301 : vector<1x128xf32>
    %303 = arith.negf %301 : vector<1x128xf32>
    %304 = math.exp %303 : vector<1x128xf32>
    %cst_60 = arith.constant 1.000000e+00 : f32
    %305 = vector.broadcast %cst_60 : f32 to vector<1x128xf32>
    %306 = arith.addf %305, %304 : vector<1x128xf32>
    %307 = arith.divf %305, %306 : vector<1x128xf32>
    %308 = arith.select %9, %302, %307 : vector<1x128xi1>, vector<1x128xf32>
    %309 = vector.extract_strided_slice %308 {offsets = [0, 0], sizes = [1, 32], strides = [1, 1]} : vector<1x128xf32> to vector<1x32xf32>
    %310 = vector.extract_strided_slice %308 {offsets = [0, 32], sizes = [1, 32], strides = [1, 1]} : vector<1x128xf32> to vector<1x32xf32>
    %311 = vector.extract_strided_slice %308 {offsets = [0, 64], sizes = [1, 32], strides = [1, 1]} : vector<1x128xf32> to vector<1x32xf32>
    %312 = vector.extract_strided_slice %308 {offsets = [0, 96], sizes = [1, 32], strides = [1, 1]} : vector<1x128xf32> to vector<1x32xf32>
    %313 = arith.mulf %310, %275 : vector<1x32xf32>
    %314 = arith.mulf %309, %311 : vector<1x32xf32>
    %315 = arith.addf %313, %314 : vector<1x32xf32>
    %316 = math.tanh %315 : vector<1x32xf32>
    %317 = arith.mulf %312, %316 : vector<1x32xf32>
    %cst_61 = arith.constant dense<0.000000e+00> : vector<1x128xf32>
    %318 = tpu.matmul %295, %77, %cst_61 {dimension_numbers = #tpu.dot_dimension_numbers<[1], [0], [0], [1], [0, 0, 1, 1], [], []>} : vector<1x32xf32>, vector<32x128xf32>, vector<1x128xf32> -> vector<1x128xf32>
    %319 = arith.addf %297, %318 : vector<1x128xf32>
    %320 = math.tanh %319 : vector<1x128xf32>
    %321 = arith.negf %319 : vector<1x128xf32>
    %322 = math.exp %321 : vector<1x128xf32>
    %cst_62 = arith.constant 1.000000e+00 : f32
    %323 = vector.broadcast %cst_62 : f32 to vector<1x128xf32>
    %324 = arith.addf %323, %322 : vector<1x128xf32>
    %325 = arith.divf %323, %324 : vector<1x128xf32>
    %326 = arith.select %9, %320, %325 : vector<1x128xi1>, vector<1x128xf32>
    %327 = vector.extract_strided_slice %326 {offsets = [0, 0], sizes = [1, 32], strides = [1, 1]} : vector<1x128xf32> to vector<1x32xf32>
    %328 = vector.extract_strided_slice %326 {offsets = [0, 32], sizes = [1, 32], strides = [1, 1]} : vector<1x128xf32> to vector<1x32xf32>
    %329 = vector.extract_strided_slice %326 {offsets = [0, 64], sizes = [1, 32], strides = [1, 1]} : vector<1x128xf32> to vector<1x32xf32>
    %330 = vector.extract_strided_slice %326 {offsets = [0, 96], sizes = [1, 32], strides = [1, 1]} : vector<1x128xf32> to vector<1x32xf32>
    %331 = arith.mulf %328, %293 : vector<1x32xf32>
    %332 = arith.mulf %327, %329 : vector<1x32xf32>
    %333 = arith.addf %331, %332 : vector<1x32xf32>
    %334 = math.tanh %333 : vector<1x32xf32>
    %335 = arith.mulf %330, %334 : vector<1x32xf32>
    %cst_63 = arith.constant dense<0.000000e+00> : vector<1x128xf32>
    %336 = tpu.matmul %317, %52, %cst_63 {dimension_numbers = #tpu.dot_dimension_numbers<[1], [0], [0], [1], [0, 0, 1, 1], [], []>} : vector<1x32xf32>, vector<32x128xf32>, vector<1x128xf32> -> vector<1x128xf32>
    %337 = arith.addf %336, %13 : vector<1x128xf32>
    %cst_64 = arith.constant dense<0.000000e+00> : vector<1x128xf32>
    %338 = tpu.matmul %335, %77, %cst_64 {dimension_numbers = #tpu.dot_dimension_numbers<[1], [0], [0], [1], [0, 0, 1, 1], [], []>} : vector<1x32xf32>, vector<32x128xf32>, vector<1x128xf32> -> vector<1x128xf32>
    %339 = arith.addf %337, %338 : vector<1x128xf32>
    %340 = math.tanh %339 : vector<1x128xf32>
    %341 = arith.negf %339 : vector<1x128xf32>
    %342 = math.exp %341 : vector<1x128xf32>
    %cst_65 = arith.constant 1.000000e+00 : f32
    %343 = vector.broadcast %cst_65 : f32 to vector<1x128xf32>
    %344 = arith.addf %343, %342 : vector<1x128xf32>
    %345 = arith.divf %343, %344 : vector<1x128xf32>
    %346 = arith.select %9, %340, %345 : vector<1x128xi1>, vector<1x128xf32>
    %347 = vector.extract_strided_slice %346 {offsets = [0, 0], sizes = [1, 32], strides = [1, 1]} : vector<1x128xf32> to vector<1x32xf32>
    %348 = vector.extract_strided_slice %346 {offsets = [0, 32], sizes = [1, 32], strides = [1, 1]} : vector<1x128xf32> to vector<1x32xf32>
    %349 = vector.extract_strided_slice %346 {offsets = [0, 64], sizes = [1, 32], strides = [1, 1]} : vector<1x128xf32> to vector<1x32xf32>
    %350 = vector.extract_strided_slice %346 {offsets = [0, 96], sizes = [1, 32], strides = [1, 1]} : vector<1x128xf32> to vector<1x32xf32>
    %351 = arith.mulf %348, %333 : vector<1x32xf32>
    %352 = arith.mulf %347, %349 : vector<1x32xf32>
    %353 = arith.addf %351, %352 : vector<1x32xf32>
    %354 = math.tanh %353 : vector<1x32xf32>
    %355 = arith.mulf %350, %354 : vector<1x32xf32>
    %c0_66 = arith.constant 0 : index
    %c0_67 = arith.constant 0 : index
    %c0_68 = arith.constant 0 : index
    %356 = vector.load %arg11[%c0_66, %c0_67, %c0_68] : memref<2x1x32xf32, #tpu.memory_space<vmem>>, vector<1x1x32xf32>
    %357 = vector.shape_cast %356 : vector<1x1x32xf32> to vector<1x32xf32>
    %358 = vector.shape_cast %317 : vector<1x32xf32> to vector<1x1x32xf32>
    tpu.vector_store %arg11[%c0_66, %c0_67, %c0_68], %358 {strides = array<i32>} : memref<2x1x32xf32, #tpu.memory_space<vmem>>, vector<1x1x32xf32>,
    %c1_69 = arith.constant 1 : index
    %c0_70 = arith.constant 0 : index
    %c0_71 = arith.constant 0 : index
    %359 = vector.load %arg11[%c1_69, %c0_70, %c0_71] : memref<2x1x32xf32, #tpu.memory_space<vmem>>, vector<1x1x32xf32>
    %360 = vector.shape_cast %359 : vector<1x1x32xf32> to vector<1x32xf32>
    %361 = vector.shape_cast %355 : vector<1x32xf32> to vector<1x1x32xf32>
    tpu.vector_store %arg11[%c1_69, %c0_70, %c0_71], %361 {strides = array<i32>} : memref<2x1x32xf32, #tpu.memory_space<vmem>>, vector<1x1x32xf32>,
    %c0_72 = arith.constant 0 : index
    %c0_73 = arith.constant 0 : index
    %c0_74 = arith.constant 0 : index
    %362 = vector.load %arg12[%c0_72, %c0_73, %c0_74] : memref<2x1x32xf32, #tpu.memory_space<vmem>>, vector<1x1x32xf32>
    %363 = vector.shape_cast %362 : vector<1x1x32xf32> to vector<1x32xf32>
    %364 = vector.shape_cast %315 : vector<1x32xf32> to vector<1x1x32xf32>
    tpu.vector_store %arg12[%c0_72, %c0_73, %c0_74], %364 {strides = array<i32>} : memref<2x1x32xf32, #tpu.memory_space<vmem>>, vector<1x1x32xf32>,
    %c1_75 = arith.constant 1 : index
    %c0_76 = arith.constant 0 : index
    %c0_77 = arith.constant 0 : index
    %365 = vector.load %arg12[%c1_75, %c0_76, %c0_77] : memref<2x1x32xf32, #tpu.memory_space<vmem>>, vector<1x1x32xf32>
    %366 = vector.shape_cast %365 : vector<1x1x32xf32> to vector<1x32xf32>
    %367 = vector.shape_cast %353 : vector<1x32xf32> to vector<1x1x32xf32>
    tpu.vector_store %arg12[%c1_75, %c0_76, %c0_77], %367 {strides = array<i32>} : memref<2x1x32xf32, #tpu.memory_space<vmem>>, vector<1x1x32xf32>,
    %c0_78 = arith.constant 0 : index
    %c0_79 = arith.constant 0 : index
    %368 = vector.load %arg9[%c0_78, %c0_79] : memref<1x32xf32, #tpu.memory_space<vmem>>, vector<1x32xf32>
    %369 = arith.mulf %355, %368 : vector<1x32xf32>
    %cst_80 = arith.constant dense<0.000000e+00> : vector<1xf32>
    %370 = vector.multi_reduction <add>, %369, %cst_80 [1] : vector<1x32xf32> to vector<1xf32>
    %371 = vector.shape_cast %370 : vector<1xf32> to vector<1x1xf32>
    %c0_81 = arith.constant 0 : index
    %c0_82 = arith.constant 0 : index
    %372 = vector.load %arg10[%c0_81, %c0_82] : memref<1x1xf32, #tpu.memory_space<vmem>>, vector<1x1xf32>
    %373 = arith.addf %371, %372 : vector<1x1xf32>
    %374 = arith.negf %373 : vector<1x1xf32>
    %375 = math.exp %374 : vector<1x1xf32>
    %cst_83 = arith.constant 1.000000e+00 : f32
    %376 = vector.broadcast %cst_83 : f32 to vector<1x1xf32>
    %377 = arith.addf %376, %375 : vector<1x1xf32>
    %378 = arith.divf %376, %377 : vector<1x1xf32>
    %c0_84 = arith.constant 0 : index
    %c0_85 = arith.constant 0 : index
    %379 = vector.load %arg13[%c0_84, %c0_85] : memref<1x1xf32, #tpu.memory_space<vmem>>, vector<1x1xf32>
    tpu.vector_store %arg13[%c0_84, %c0_85], %378 {strides = array<i32>} : memref<1x1xf32, #tpu.memory_space<vmem>>, vector<1x1xf32>,
    return
  }
}

</mosaic_0001>

<bundles_post_ra>
// kernel: tpu_custom_call.1
= control target key start
LH: loop header
LB: loop body
LE: loop exit
PB: predicated region body
PF: predicated region fallthrough
CT: control target
= control target key end

     0   :  { %s4061_s0 = inlined_call_operand.vmem [shape: f32[1,8,1], index: 0, kind: input, shape index: {}]   ;;  %s4062_s1 = inlined_call_operand.vmem [shape: f32[2,1,32], index: 1, kind: input, shape index: {}]   ;;  %s4063_s2 = inlined_call_operand.hbm [shape: f32[2,1,32], index: 2, kind: input, shape index: {}]   ;;  %s4064_s3 = inlined_call_operand.vmem [shape: f32[1,128], index: 3, kind: input, shape index: {}]   ;;  %s4065_s4 = inlined_call_operand.hbm [shape: f32[32,128], index: 4, kind: input, shape index: {}]   ;;  %s4066_s5 = inlined_call_operand.hbm [shape: f32[1,128], index: 5, kind: input, shape index: {}]   ;;  %s4067_s6 = inlined_call_operand.vmem [shape: f32[32,128], index: 6, kind: input, shape index: {}]   ;;  %s4068_s7 = inlined_call_operand.hbm [shape: f32[32,128], index: 7, kind: input, shape index: {}]   ;;  %s4069_s8 = inlined_call_operand.vmem [shape: f32[1,128], index: 8, kind: input, shape index: {}]   ;;  %s4070_s9 = inlined_call_operand.vmem [shape: f32[1,32], index: 9, kind: input, shape index: {}]   ;;  %s4071_s10 = inlined_call_operand.<no memory space> [shape: f32[1,1], index: 10, kind: input, shape index: {}]   ;;  %s4072_s11 = inlined_call_operand.hbm [shape: f32[2,1,32], index: 11, kind: output, shape index: {0}]   ;;  %s4073_s12 = inlined_call_operand.hbm [shape: f32[2,1,32], index: 12, kind: output, shape index: {1}]   ;;  %s4074_s13 = inlined_call_operand.hbm [shape: f32[1,1], index: 13, kind: output, shape index: {2}]  }
   0x1   :  { %v19_v0 = vstv %s4071_s10 }
   0x2   :  { %20 = vst [vmem:[#allocation5] sm:$0x1] %v19_v0 }
   0x3   :  { %21 = vsyncpa [#allocation7], 0 }
   0x4   :  { %22 = vsyncpa [#allocation10], 0 }
   0x5   :  { %23 = vsyncpa [#allocation8], 0 }
   0x6   :  { %24 = vsyncpa [#allocation14], 0  ;;  %s3470_s27 = smov [#allocation9]   ;;  %s3304_s14 = scalar_lea.hbm %s4065_s4, 512 }
   0x7   :  { %s48_s28 = sshll.u32 %s3470_s27, 4  ;;  %p3305_p0 = scmp.ne.s32.totalorder %s4065_s4, %s3304_s14  ;;  %s49_s28 = int_to_ptr.vmem [resolvable:$true] %s48_s28 }
   0x8   :  { %p3308_p1 = scmp.lt.u32.totalorder %s3304_s14, %s4065_s4 }
   0xa   :  { %p3310_p2 = pnand %p3308_p1, %p3305_p0 }
   0xc   :  { %3313 = shalt.err (!%p3310_p2)
}
   0xd   :  { %s3314_s10 = scalar_lea.vmem %s49_s28, 512  ;;  %p3319_p4 = scmp.lt.s32.totalorder %s49_s28, %s49_s28 }
   0xe   :  { %p3315_p3 = scmp.ne.s32.totalorder %s49_s28, %s3314_s10  ;;  %p3320_p5 = scmp.lt.s32.totalorder %s3314_s10, %s3314_s10 }
  0x10   :  { %p3321_p6 = por %p3320_p5, %p3319_p4 }
  0x12   :  { %p3322_p7 = pnand %p3321_p6, %p3315_p3 }
  0x14   :  { %3325 = shalt.err (!%p3322_p7)
}
  0x15   :  { %s3471_s19 = smov 128   ;;  %s3472_s20 = smov 8  }
  0x16   :  { %54 = dma.hbm_to_vmem [thread:$0]  %s4065_s4, 512, %s49_s28, [#allocation10], %s3471_s19, %s3471_s19, %s3472_s20  }
  0x17   :  { %s3473_s23 = smov [#allocation6]   ;;  %s3326_s27 = scalar_lea.hbm %s4063_s2, 32 }
  0x18   :  { %s34_s24 = sshll.u32 %s3473_s23, 4  ;;  %p3327_p8 = scmp.ne.s32.totalorder %s4063_s2, %s3326_s27  ;;  %s35_s24 = int_to_ptr.vmem [resolvable:$true] %s34_s24 }
  0x19   :  { %p3330_p9 = scmp.lt.u32.totalorder %s3326_s27, %s4063_s2 }
  0x1b   :  { %p3332_p10 = pnand %p3330_p9, %p3327_p8 }
  0x1d   :  { %3335 = shalt.err (!%p3332_p10)
}
  0x1e   :  { %s3336_s16 = scalar_lea.vmem %s35_s24, 32  ;;  %p3341_p12 = scmp.lt.s32.totalorder %s35_s24, %s35_s24 }
  0x1f   :  { %p3337_p11 = scmp.ne.s32.totalorder %s35_s24, %s3336_s16  ;;  %p3342_p13 = scmp.lt.s32.totalorder %s3336_s16, %s3336_s16 }
  0x21   :  { %p3343_p0 = por %p3342_p13, %p3341_p12 }
  0x23   :  { %p3344_p1 = pnand %p3343_p0, %p3337_p11 }
  0x25   :  { %3347 = shalt.err (!%p3344_p1)
}
  0x26   :  { %s3474_s4 = smov 16   ;;  %s3475_s28 = smov 1  }
  0x27   :  { %40 = dma.hbm_to_vmem [thread:$0]  %s4063_s2, 32, %s35_s24, [#allocation7], %s3474_s4, %s3474_s4, %s3475_s28  }
  0x28   :  { %s3476_s10 = smov [#allocation11]   ;;  %s3348_s22 = scalar_lea.hbm %s4066_s5, 16 }
  0x29   :  { %s61_s19 = sshll.u32 %s3476_s10, 4  ;;  %p3349_p2 = scmp.ne.s32.totalorder %s4066_s5, %s3348_s22  ;;  %s62_s19 = int_to_ptr.vmem [resolvable:$true] %s61_s19 }
  0x2a   :  { %p3352_p3 = scmp.lt.u32.totalorder %s3348_s22, %s4066_s5 }
  0x2c   :  { %p3354_p4 = pnand %p3352_p3, %p3349_p2 }
  0x2e   :  { %3357 = shalt.err (!%p3354_p4)
}
  0x2f   :  { %s3358_s29 = scalar_lea.vmem %s62_s19, 16  ;;  %s3362_s2 = scalar_lea.vmem %s62_s19, 32 }
  0x30   :  { %p3359_p5 = scmp.ne.s32.totalorder %s62_s19, %s3358_s29  ;;  %p3363_p6 = scmp.lt.s32.totalorder %s62_s19, %s62_s19 }
  0x31   :  { %p3364_p7 = scmp.lt.s32.totalorder %s3362_s2, %s3358_s29 }
  0x33   :  { %p3365_p8 = por %p3364_p7, %p3363_p6 }
  0x35   :  { %p3366_p9 = pnand %p3365_p8, %p3359_p5 }
  0x37   :  { %3369 = shalt.err (!%p3366_p9)
}
  0x38   :  { %64 = dma.hbm_to_vmem [thread:$0]  %s4066_s5, 16, %s62_s19, [#allocation10]  }
  0x39   :  { %3458 = dma.done.wait [#allocation7], 32  }
  0x3a   :  { %3459 = vsyncadd [#allocation7], 4294967264 }
  0x3b   :  { %3460 = dma.done.wait [#allocation10], 528  }
  0x3c   :  { %3461 = vsyncadd [#allocation10], 4294966768  ;;  %v3603_v1 = vld [vmem:[%s4067_s6] sm:$0xff]  ;;  %v3608_v2 = vld [vmem:[%s4067_s6 + $0x8] sm:$0xff]  ;;  %v3477_v11 = vmov 0.0|0.0   ;;  %vm3478_vm0 = vmmov 0  }
  0x3d   :  { %v3613_v3 = vld [vmem:[%s4067_s6 + $0x10] sm:$0xff]  ;;  %v3618_v4 = vld [vmem:[%s4067_s6 + $0x18] sm:$0xff]  ;;  %v3623_v5 = vld [vmem:[%s4069_s8] sm:$0x1]  ;;  %2985 = vmatprep.subr.bf16.mxu1 %v3477_v11  ;;  %v3479_v14 = vmov 0.0   ;;  %v3480_v16 = vmov 0  }
  0x3e   :  { %v3628_v6 = vld [vmem:[%s4062_s1 + $0x1] sm:$0x1]  ;;  %v3630_v7 = vld [vmem:[#allocation6 + $0x1] ss:$0 sm:$0xff]  ;;  %v146_v8 = vld [vmem:[#allocation9] sm:$0xff]  ;;  %2729 = vmatprep.mubr.msk.f32.mxu1 %vm3478_vm0, %v3479_v14  ;;  %3171 = vset.pattern.permute.xlu0 %v3480_v16 }
  0x3f   :  { %v147_v9 = vld [vmem:[#allocation9 + $0x8] sm:$0xff]  ;;  %v148_v10 = vld [vmem:[#allocation9 + $0x10] sm:$0xff]  ;;  %v149_v13 = vld [vmem:[#allocation9 + $0x18] sm:$0xff] }
  0x40   :  { %v3633_v12 = vpack.c.bf16 %v147_v9, %v146_v8  ;;  %v152_v15 = vld [vmem:[%s4061_s0] sm:$0xff]  ;;  %v3641_v18 = vpack.c.bf16 %v149_v13, %v148_v10 }
  0x41   :  { %v2557_v17 = vld [vmem:[#allocation6] ss:$0 sm:$0xff]  ;;  %155 = vperm.xlu0 %3171, %v152_v15  }
  0x42   :  { %2987 = vmatpush3.bf16.msra.mxu1 %v3633_v12 }
  0x43   :  { %127 = vsyncadd [#allocation4], 512  ;;  %2988 = vmatprep.subr.bf16.mxu1 %v3477_v11  ;;  %s3481_s25 = smov 32   ;;  %v172_v19 = vld [vmem:[%s4062_s1] sm:$0x1]  ;;  %vm178_vm1 = vcmask 261120   ;;  %v140_v30 = vlaneseq }
  0x44   :  { %266 = vrot.lane.b32.xlu1 %v2557_v17, %s3481_s25  ;;  %v2552_v21 = vld [vmem:[%s4064_s3] ss:$0 sm:$0xff]  ;;  %v2553_v23 = vld [vmem:[#allocation11] ss:$0 sm:$0xff]  ;;  %s3482_s1 = smov 64   ;;  %s3483_s3 = smov [#allocation3]  }
  0x45   :  { %v141_v32 = vand.u32 127, %v140_v30  ;;  %s136_s2 = sshll.u32 %s3483_s3, 4  ;;  %s3370_s14 = scalar_lea.hbm %s4068_s7, 512  ;;  %s137_s2 = int_to_ptr.vmem [resolvable:$true] %s136_s2 }
  0x46   :  { %2990 = vmatpush3.bf16.msra.mxu1 %v3641_v18  ;;  %p3371_p10 = scmp.ne.s32.totalorder %s4068_s7, %s3370_s14  ;;  %p3374_p11 = scmp.lt.u32.totalorder %s3370_s14, %s4068_s7 }
  0x47   :  { %vm142_vm2 = vcmp.ge.s32.totalorder %v141_v32, 64  ;;  %vm143_vm3 = vcmp.lt.s32.totalorder %v141_v32, 96 }
  0x48   :  { %vm3656_vm4 = vmand %vm142_vm2, %vm143_vm3  ;;  %p3376_p12 = pnand %p3374_p11, %p3371_p10 }
  0x49   :  { %2730 = vmatmul.mubr.msk.f32.vlgmr.msra.gmra.mrb[0].mxu1 %vm178_vm1, %v172_v19 }
  0xb6   :  { %v267_v39 = vpop.permute.xlu1 %266 }
  0xc0   :  { %v156_v20 = vpop.permute.xlu0 %155 }
  0xc1   :  { %v164_v22 = vmul.f32 %v2552_v21, %v156_v20 }
  0xc3   :  { %v3653_v24 = vadd.f32 %v2553_v23, %v164_v22 }
 0x11c   :  { %v248_v25 = vpop.f32.mrb[0].mxu1 }
 0x11d   :  { %v252_v26 = vadd.f32 %v248_v25, %v3653_v24  ;;  %v2731_v27 = vpop.f32.mrb[1].mxu1 }
 0x11f   :  { %v2556_v28 = vmul.f32 -1.442695, %v252_v26 }
 0x121   :  { %3172 = vpow2.f32 %v2556_v28 }
 0x122   :  { %3174 = vtanh.f32 %v252_v26 }
 0x12b   :  { %v3173_v29 = vpop.eup %3172 }
 0x12c   :  { %v257_v31 = vadd.f32 1.0, %v3173_v29  ;;  %v3175_v34 = vpop.eup %3174 }
 0x12e   :  { %3176 = vrcp.f32 %v257_v31 }
 0x138   :  { %v3177_v35 = vpop.eup %3176 }
 0x139   :  { %v260_v36 = vsel %vm3656_vm4, %v3175_v34, %v3177_v35 }
 0x13a   :  { %271 = vrot.lane.b32.xlu0 %v260_v36, %s3482_s1  ;;  %v269_v40 = vmul.f32 %v267_v39, %v260_v36 }
 0x1ac   :  { %v272_v37 = vpop.permute.xlu0 %271 }
 0x1ad   :  { %v274_v38 = vmul.f32 %v272_v37, %v260_v36 }
 0x1af   :  { %276 = vrot.lane.b32.xlu1 %v274_v38, %s3481_s25 }
 0x221   :  { %v277_v41 = vpop.permute.xlu1 %276 }
 0x222   :  { %v279_v42 = vadd.f32 %v277_v41, %v269_v40 }
 0x223   :  { %3379 = shalt.err (!%p3376_p12)  }
 0x224   :  { %s3380_s10 = scalar_lea.vmem %s137_s2, 512  ;;  %p3385_p0 = scmp.lt.s32.totalorder %s137_s2, %s137_s2 }
 0x225   :  { %p3381_p13 = scmp.ne.s32.totalorder %s137_s2, %s3380_s10  ;;  %p3386_p1 = scmp.lt.s32.totalorder %s3380_s10, %s3380_s10 }
 0x227   :  { %p3387_p2 = por %p3386_p1, %p3385_p0 }
 0x229   :  { %p3388_p3 = pnand %p3387_p2, %p3381_p13 }
 0x22b   :  { %3391 = shalt.err (!%p3388_p3)  }
 0x22c   :  { %139 = dma.hbm_to_vmem [thread:$0]  %s4068_s7, 512, %s137_s2, [#allocation4 + $0x1]  ;;  %3178 = vtanh.f32 %v279_v42  ;;  %2991 = vmatprep.subr.bf16.mxu1 %v3477_v11  ;;  %v3681_v46 = vpack.c.bf16 %v3608_v2, %v3603_v1 }
 0x236   :  { %v3179_v43 = vpop.eup %3178 }
 0x237   :  { %282 = vrot.lane.b32.xlu0 %v3179_v43, %s3482_s1 }
 0x2a9   :  { %v283_v44 = vpop.permute.xlu0 %282 }
 0x2aa   :  { %v285_v45 = vmul.f32 %v283_v44, %v260_v36 }
 0x2ac   :  { %294 = vrot.lane.b32.xlu0 %v285_v45, %s3481_s25 }
 0x2ad   :  { %3462 = dma.done.wait [#allocation4], 512 }
 0x2ae   :  { %3463 = vsyncadd [#allocation4], 4294966784  ;;  %2997 = vmatprep.subr.bf16.mxu0 %v3477_v11  ;;  %2740 = vmatprep.mubr.msk.f32.mxu1 %vm3478_vm0, %v3479_v14  ;;  %v3690_v47 = vpack.c.bf16 %v3618_v4, %v3613_v3  ;;  %v451_v61 = vrot.slane %v279_v42, 7 }
 0x2af   :  { %2993 = vmatpush3.bf16.msra.mxu1 %v3681_v46  ;;  %2999 = vmatpush3.bf16.msra.mxu0 %v3633_v12 }
 0x2b0   :  { %2994 = vmatprep.subr.bf16.mxu1 %v3477_v11  ;;  %3000 = vmatprep.subr.bf16.mxu0 %v3477_v11 }
 0x2b1   :  { %2751 = vmatprep.mubr.msk.f32.mxu0 %vm3478_vm0, %v3479_v14 }
 0x2b3   :  { %2996 = vmatpush3.bf16.msra.mxu1 %v3690_v47  ;;  %3002 = vmatpush3.bf16.msra.mxu0 %v3641_v18 }
 0x31e   :  { %v295_v48 = vpop.permute.xlu0 %294 }
 0x31f   :  { %2741 = vmatmul.mubr.msk.f32.vlgmr.msra.gmra.mrb[2].mxu1 %vm178_vm1, %v295_v48  ;;  %2752 = vmatmul.mubr.msk.f32.vlgmr.msra.gmra.mrb[0].mxu0 %vm178_vm1, %v295_v48 }
 0x3f2   :  { %v434_v49 = vpop.f32.mrb[0].mxu0 }
 0x3f3   :  { %v439_v50 = vrot.slane %v434_v49, 7  ;;  %v2753_v51 = vpop.f32.mrb[1].mxu0 }
 0x3f5   :  { %v441_v52 = vadd.f32 %v439_v50, %v3653_v24 }
 0x3f7   :  { %v2560_v53 = vmul.f32 -1.442695, %v441_v52 }
 0x3f9   :  { %3180 = vpow2.f32 %v2560_v53 }
 0x3fa   :  { %3182 = vtanh.f32 %v441_v52 }
 0x403   :  { %v3181_v54 = vpop.eup %3180 }
 0x404   :  { %v446_v55 = vadd.f32 1.0, %v3181_v54  ;;  %v3183_v56 = vpop.eup %3182 }
 0x406   :  { %3184 = vrcp.f32 %v446_v55 }
 0x410   :  { %v3185_v57 = vpop.eup %3184 }
 0x411   :  { %v449_v58 = vsel %vm3656_vm4, %v3183_v56, %v3185_v57 }
 0x412   :  { %455 = vrot.lane.b32.xlu0 %v449_v58, %s3482_s1  ;;  %v453_v62 = vmul.f32 %v451_v61, %v449_v58 }
 0x484   :  { %v456_v59 = vpop.permute.xlu0 %455 }
 0x485   :  { %v458_v60 = vmul.f32 %v456_v59, %v449_v58 }
 0x487   :  { %460 = vrot.lane.b32.xlu1 %v458_v60, %s3481_s25 }
 0x4f9   :  { %v461_v63 = vpop.permute.xlu1 %460 }
 0x4fa   :  { %v3705_v0 = vadd.f32 %v461_v63, %v453_v62 }
 0x4fc   :  { %3186 = vtanh.f32 %v3705_v0 }
 0x506   :  { %v3187_v1 = vpop.eup %3186 }
 0x507   :  { %466 = vrot.lane.b32.xlu1 %v3187_v1, %s3482_s1 }
 0x579   :  { %v467_v2 = vpop.permute.xlu1 %466 }
 0x57a   :  { %v469_v3 = vmul.f32 %v467_v2, %v449_v58 }
 0x57b   :  { %3464 = dma.done.wait [#allocation4 + $0x1], 512 }
 0x57c   :  { %3465 = vsyncadd [#allocation4 + $0x1], 4294966784  ;;  %3003 = vmatprep.subr.bf16.mxu1 %v3477_v11  ;;  %2762 = vmatprep.mubr.msk.f32.mxu1 %vm3478_vm0, %v3479_v14  ;;  %v472_v4 = vld [vmem:[#allocation3] sm:$0xff]  ;;  %v473_v8 = vld [vmem:[#allocation3 + $0x8] sm:$0xff]  ;;  %v584_v26 = vrot.slane %v469_v3, 1  ;;  %v742_v52 = vrot.slane %v3705_v0, 7 }
 0x57d   :  { %3009 = vmatprep.subr.bf16.mxu0 %v3477_v11  ;;  %2773 = vmatprep.mubr.msk.f32.mxu0 %vm3478_vm0, %v3479_v14  ;;  %v474_v9 = vld [vmem:[#allocation3 + $0x10] sm:$0xff]  ;;  %v3719_v10 = vpack.c.bf16 %v473_v8, %v472_v4  ;;  %v475_v13 = vld [vmem:[#allocation3 + $0x18] sm:$0xff]  ;;  %s3484_s21 = smov 96   ;;  %vm2444_vm5 = vcmask 253952   ;;  %vm2437_vm6 = vcmask 261127   ;;  %s3486_s23 = smov [#allocation12]  }
 0x57e   :  { %3011 = vmatpush3.bf16.msra.mxu0 %v3681_v46  ;;  %v3722_v15 = vpack.c.bf16 %v475_v13, %v474_v9  ;;  %s2489_s6 = sshll.u32 %s3486_s23, 4  ;;  %s4012_s6 = int_to_ptr.vmem [resolvable:$true] %s2489_s6 }
 0x57f   :  { %3012 = vmatprep.subr.bf16.mxu0 %v3477_v11  ;;  %3005 = vmatpush3.bf16.msra.mxu1 %v3719_v10 }
 0x580   :  { %3006 = vmatprep.subr.bf16.mxu1 %v3477_v11 }
 0x582   :  { %3014 = vmatpush3.bf16.msra.mxu0 %v3690_v47 }
 0x583   :  { %3021 = vmatprep.subr.bf16.mxu0 %v3477_v11  ;;  %3008 = vmatpush3.bf16.msra.mxu1 %v3722_v15 }
 0x584   :  { %3015 = vmatprep.subr.bf16.mxu1 %v3477_v11 }
 0x586   :  { %2763 = vmatmul.mubr.msk.f32.vlgmr.msra.gmra.mrb[2].mxu1 %vm178_vm1, %v3628_v6 }
 0x587   :  { %3017 = vmatpush3.bf16.msra.mxu1 %v3633_v12  ;;  %2784 = vmatprep.mubr.msk.f32.mxu1 %vm3478_vm0, %v3479_v14 }
 0x588   :  { %3018 = vmatprep.subr.bf16.mxu1 %v3477_v11 }
 0x58b   :  { %3020 = vmatpush3.bf16.msra.mxu1 %v3641_v18 }
 0x58c   :  { %3027 = vmatprep.subr.bf16.mxu1 %v3477_v11 }
 0x659   :  { %v545_v16 = vpop.f32.mrb[2].mxu1 }
 0x65a   :  { %v3129_v17 = vadd.f32 %v545_v16, %v3623_v5  ;;  %v2764_v19 = vpop.f32.mrb[3].mxu1 }
 0x65c   :  { %v2562_v20 = vmul.f32 -1.442695, %v3129_v17 }
 0x65e   :  { %3188 = vpow2.f32 %v2562_v20 }
 0x65f   :  { %3190 = vtanh.f32 %v3129_v17 }
 0x668   :  { %v3189_v21 = vpop.eup %3188 }
 0x669   :  { %v554_v22 = vadd.f32 1.0, %v3189_v21  ;;  %v3191_v6 = vpop.eup %3190 }
 0x66b   :  { %3192 = vrcp.f32 %v554_v22 }
 0x675   :  { %v3193_v23 = vpop.eup %3192 }
 0x676   :  { %v557_v25 = vsel %vm3656_vm4, %v3191_v6, %v3193_v23 }
 0x677   :  { %568 = vrot.lane.b32.xlu0 %v557_v25, %s3482_s1 }
 0x67b   :  { %563 = vrot.lane.b32.xlu0 %v3630_v7, %s3481_s25 }
 0x67f   :  { %585 = vrot.lane.b32.xlu0 %v584_v26, %s3481_s25 }
 0x6e9   :  { %v569_v27 = vpop.permute.xlu0 %568 }
 0x6ea   :  { %v571_v28 = vmul.f32 %v569_v27, %v557_v25 }
 0x6ec   :  { %573 = vrot.lane.b32.xlu1 %v571_v28, %s3481_s25 }
 0x6ed   :  { %v564_v29 = vpop.permute.xlu0 %563 }
 0x6ee   :  { %v566_v7 = vmul.f32 %v564_v29, %v557_v25 }
 0x6f1   :  { %v586_v30 = vpop.permute.xlu0 %585 }
 0x6f2   :  { %2785 = vmatmul.mubr.msk.f32.vlgmr.msra.gmra.mrb[4].mxu1 %vm178_vm1, %v586_v30  ;;  %2774 = vmatmul.mubr.msk.f32.vlgmr.msra.gmra.mrb[2].mxu0 %vm178_vm1, %v586_v30 }
 0x6f3   :  { %3023 = vmatpush3.bf16.msra.mxu0 %v3719_v10  ;;  %2795 = vmatprep.mubr.msk.f32.mxu0 %vm3478_vm0, %v3479_v14 }
 0x6f4   :  { %3024 = vmatprep.subr.bf16.mxu0 %v3477_v11  ;;  %3029 = vmatpush3.bf16.msra.mxu1 %v3681_v46 }
 0x6f5   :  { %3030 = vmatprep.subr.bf16.mxu1 %v3477_v11  ;;  %2806 = vmatprep.mubr.msk.f32.mxu1 %vm3478_vm0, %v3479_v14 }
 0x6f7   :  { %3026 = vmatpush3.bf16.msra.mxu0 %v3722_v15 }
 0x6f8   :  { %3033 = vmatprep.subr.bf16.mxu0 %v3477_v11  ;;  %3032 = vmatpush3.bf16.msra.mxu1 %v3690_v47 }
 0x6f9   :  { %3039 = vmatprep.subr.bf16.mxu1 %v3477_v11 }
 0x75e   :  { %v574_v31 = vpop.permute.xlu1 %573 }
 0x75f   :  { %v3757_v32 = vadd.f32 %v574_v31, %v566_v7 }
 0x761   :  { %3194 = vtanh.f32 %v3757_v32 }
 0x76b   :  { %v3195_v34 = vpop.eup %3194 }
 0x76c   :  { %579 = vrot.lane.b32.xlu1 %v3195_v34, %s3482_s1 }
 0x7c5   :  { %v725_v35 = vpop.f32.mrb[4].mxu1 }
 0x7c6   :  { %v730_v36 = vrot.slane %v725_v35, 6  ;;  %v2786_v37 = vpop.f32.mrb[5].mxu1 }
 0x7c8   :  { %v732_v38 = vadd.f32 %v730_v36, %v3653_v24 }
 0x7ca   :  { %v2566_v39 = vmul.f32 -1.442695, %v732_v38 }
 0x7cc   :  { %3196 = vpow2.f32 %v2566_v39 }
 0x7cd   :  { %3198 = vtanh.f32 %v732_v38 }
 0x7d6   :  { %v3197_v40 = vpop.eup %3196 }
 0x7d7   :  { %v737_v41 = vadd.f32 1.0, %v3197_v40  ;;  %v3199_v44 = vpop.eup %3198 }
 0x7d9   :  { %3200 = vrcp.f32 %v737_v41 }
 0x7de   :  { %v580_v42 = vpop.permute.xlu1 %579 }
 0x7df   :  { %v582_v43 = vmul.f32 %v580_v42, %v557_v25 }
 0x7e1   :  { %762 = vrot.lane.b32.xlu1 %v582_v43, %s3481_s25 }
 0x7e3   :  { %v3201_v45 = vpop.eup %3200 }
 0x7e4   :  { %v740_v48 = vsel %vm3656_vm4, %v3199_v44, %v3201_v45 }
 0x7e5   :  { %746 = vrot.lane.b32.xlu0 %v740_v48, %s3482_s1  ;;  %v744_v53 = vmul.f32 %v742_v52, %v740_v48 }
 0x853   :  { %v763_v49 = vpop.permute.xlu1 %762 }
 0x854   :  { %2796 = vmatmul.mubr.msk.f32.vlgmr.msra.gmra.mrb[2].mxu0 %vm178_vm1, %v763_v49 }
 0x855   :  { %3035 = vmatpush3.bf16.msra.mxu0 %v3633_v12  ;;  %2817 = vmatprep.mubr.msk.f32.mxu0 %vm3478_vm0, %v3479_v14 }
 0x856   :  { %3036 = vmatprep.subr.bf16.mxu0 %v3477_v11 }
 0x857   :  { %v747_v50 = vpop.permute.xlu0 %746 }
 0x858   :  { %v749_v51 = vmul.f32 %v747_v50, %v740_v48 }
 0x859   :  { %3038 = vmatpush3.bf16.msra.mxu0 %v3641_v18 }
 0x85a   :  { %751 = vrot.lane.b32.xlu0 %v749_v51, %s3481_s25  ;;  %3045 = vmatprep.subr.bf16.mxu0 %v3477_v11 }
 0x8cc   :  { %v752_v54 = vpop.permute.xlu0 %751 }
 0x8cd   :  { %v3775_v55 = vadd.f32 %v752_v54, %v744_v53 }
 0x8cf   :  { %3202 = vtanh.f32 %v3775_v55  ;;  %v1021_v36 = vrot.slane %v3775_v55, 7 }
 0x8d9   :  { %v3203_v56 = vpop.eup %3202 }
 0x8da   :  { %757 = vrot.lane.b32.xlu0 %v3203_v56, %s3482_s1 }
 0x927   :  { %v832_v57 = vpop.f32.mrb[2].mxu0 }
 0x928   :  { %v3130_v58 = vadd.f32 %v832_v57, %v3623_v5  ;;  %v2797_v59 = vpop.f32.mrb[3].mxu0 }
 0x92a   :  { %v2568_v60 = vmul.f32 -1.442695, %v3130_v58 }
 0x92c   :  { %3204 = vpow2.f32 %v2568_v60 }
 0x92d   :  { %3206 = vtanh.f32 %v3130_v58 }
 0x936   :  { %v3205_v61 = vpop.eup %3204 }
 0x937   :  { %v841_v62 = vadd.f32 1.0, %v3205_v61  ;;  %v3207_v63 = vpop.eup %3206 }
 0x939   :  { %3208 = vrcp.f32 %v841_v62 }
 0x943   :  { %v3209_v0 = vpop.eup %3208 }
 0x944   :  { %v844_v1 = vsel %vm3656_vm4, %v3207_v63, %v3209_v0 }
 0x945   :  { %847 = vrot.lane.b32.xlu1 %v844_v1, %s3482_s1  ;;  %v845_v16 = vmul.f32 %v844_v1, %v3757_v32 }
 0x94c   :  { %v758_v2 = vpop.permute.xlu0 %757 }
 0x94d   :  { %v760_v3 = vmul.f32 %v758_v2, %v740_v48 }
 0x94f   :  { %v863_v4 = vrot.slane %v760_v3, 2 }
 0x951   :  { %864 = vrot.lane.b32.xlu0 %v863_v4, %s3481_s25 }
 0x9b7   :  { %v848_v8 = vpop.permute.xlu1 %847 }
 0x9b8   :  { %v850_v9 = vmul.f32 %v848_v8, %v844_v1 }
 0x9ba   :  { %852 = vrot.lane.b32.xlu1 %v850_v9, %s3481_s25 }
 0x9c3   :  { %v865_v13 = vpop.permute.xlu0 %864 }
 0x9c4   :  { %2807 = vmatmul.mubr.msk.f32.vlgmr.msra.gmra.mrb[6].mxu1 %vm178_vm1, %v865_v13  ;;  %2818 = vmatmul.mubr.msk.f32.vlgmr.msra.gmra.mrb[4].mxu0 %vm178_vm1, %v865_v13 }
 0x9c5   :  { %3041 = vmatpush3.bf16.msra.mxu1 %v3719_v10  ;;  %2828 = vmatprep.mubr.msk.f32.mxu1 %vm3478_vm0, %v3479_v14 }
 0x9c6   :  { %3042 = vmatprep.subr.bf16.mxu1 %v3477_v11  ;;  %3047 = vmatpush3.bf16.msra.mxu0 %v3681_v46 }
 0x9c7   :  { %3048 = vmatprep.subr.bf16.mxu0 %v3477_v11  ;;  %2839 = vmatprep.mubr.msk.f32.mxu0 %vm3478_vm0, %v3479_v14 }
 0x9c9   :  { %3044 = vmatpush3.bf16.msra.mxu1 %v3722_v15 }
 0x9ca   :  { %3051 = vmatprep.subr.bf16.mxu1 %v3477_v11  ;;  %3050 = vmatpush3.bf16.msra.mxu0 %v3690_v47 }
 0x9cb   :  { %3057 = vmatprep.subr.bf16.mxu0 %v3477_v11 }
 0xa2c   :  { %v853_v17 = vpop.permute.xlu1 %852 }
 0xa2d   :  { %v3800_v19 = vadd.f32 %v853_v17, %v845_v16 }
 0xa2f   :  { %3210 = vtanh.f32 %v3800_v19 }
 0xa39   :  { %v3211_v20 = vpop.eup %3210 }
 0xa3a   :  { %858 = vrot.lane.b32.xlu1 %v3211_v20, %s3482_s1 }
 0xa97   :  { %v1004_v21 = vpop.f32.mrb[4].mxu0 }
 0xa98   :  { %v1009_v22 = vrot.slane %v1004_v21, 5  ;;  %v2819_v6 = vpop.f32.mrb[5].mxu0 }
 0xa9a   :  { %v1011_v23 = vadd.f32 %v1009_v22, %v3653_v24 }
 0xa9c   :  { %v2571_v25 = vmul.f32 -1.442695, %v1011_v23 }
 0xa9e   :  { %3212 = vpow2.f32 %v2571_v25 }
 0xa9f   :  { %3214 = vtanh.f32 %v1011_v23 }
 0xaa8   :  { %v3213_v26 = vpop.eup %3212 }
 0xaa9   :  { %v1016_v27 = vadd.f32 1.0, %v3213_v26  ;;  %v3215_v30 = vpop.eup %3214 }
 0xaab   :  { %3216 = vrcp.f32 %v1016_v27 }
 0xaac   :  { %v859_v28 = vpop.permute.xlu1 %858 }
 0xaad   :  { %v861_v29 = vmul.f32 %v859_v28, %v844_v1 }
 0xaaf   :  { %1041 = vrot.lane.b32.xlu1 %v861_v29, %s3481_s25 }
 0xab5   :  { %v3217_v7 = vpop.eup %3216 }
 0xab6   :  { %v1019_v31 = vsel %vm3656_vm4, %v3215_v30, %v3217_v7 }
 0xab7   :  { %1025 = vrot.lane.b32.xlu0 %v1019_v31, %s3482_s1  ;;  %v1023_v37 = vmul.f32 %v1021_v36, %v1019_v31 }
 0xb21   :  { %v1042_v32 = vpop.permute.xlu1 %1041 }
 0xb22   :  { %2829 = vmatmul.mubr.msk.f32.vlgmr.msra.gmra.mrb[6].mxu1 %vm178_vm1, %v1042_v32 }
 0xb23   :  { %3053 = vmatpush3.bf16.msra.mxu1 %v3633_v12  ;;  %2850 = vmatprep.mubr.msk.f32.mxu1 %vm3478_vm0, %v3479_v14 }
 0xb24   :  { %3054 = vmatprep.subr.bf16.mxu1 %v3477_v11 }
 0xb27   :  { %3056 = vmatpush3.bf16.msra.mxu1 %v3641_v18 }
 0xb28   :  { %3063 = vmatprep.subr.bf16.mxu1 %v3477_v11 }
 0xb29   :  { %v1026_v34 = vpop.permute.xlu0 %1025 }
 0xb2a   :  { %v1028_v35 = vmul.f32 %v1026_v34, %v1019_v31 }
 0xb2c   :  { %1030 = vrot.lane.b32.xlu0 %v1028_v35, %s3481_s25 }
 0xb9e   :  { %v1031_v38 = vpop.permute.xlu0 %1030 }
 0xb9f   :  { %v3818_v39 = vadd.f32 %v1031_v38, %v1023_v37 }
 0xba1   :  { %3218 = vtanh.f32 %v3818_v39  ;;  %v1300_v22 = vrot.slane %v3818_v39, 7 }
 0xbab   :  { %v3219_v40 = vpop.eup %3218 }
 0xbac   :  { %1036 = vrot.lane.b32.xlu0 %v3219_v40, %s3482_s1 }
 0xbf5   :  { %v1111_v41 = vpop.f32.mrb[6].mxu1 }
 0xbf6   :  { %v3131_v42 = vadd.f32 %v1111_v41, %v3623_v5  ;;  %v2830_v43 = vpop.f32.mrb[7].mxu1 }
 0xbf8   :  { %v2573_v44 = vmul.f32 -1.442695, %v3131_v42 }
 0xbfa   :  { %3220 = vpow2.f32 %v2573_v44 }
 0xbfb   :  { %3222 = vtanh.f32 %v3131_v42 }
 0xc04   :  { %v3221_v45 = vpop.eup %3220 }
 0xc05   :  { %v1120_v48 = vadd.f32 1.0, %v3221_v45  ;;  %v3223_v49 = vpop.eup %3222 }
 0xc07   :  { %3224 = vrcp.f32 %v1120_v48 }
 0xc11   :  { %v3225_v50 = vpop.eup %3224 }
 0xc12   :  { %v1123_v51 = vsel %vm3656_vm4, %v3223_v49, %v3225_v50 }
 0xc13   :  { %1126 = vrot.lane.b32.xlu1 %v1123_v51, %s3482_s1  ;;  %v1124_v58 = vmul.f32 %v1123_v51, %v3800_v19 }
 0xc1e   :  { %v1037_v52 = vpop.permute.xlu0 %1036 }
 0xc1f   :  { %v1039_v53 = vmul.f32 %v1037_v52, %v1019_v31 }
 0xc21   :  { %v1142_v54 = vrot.slane %v1039_v53, 3 }
 0xc23   :  { %1143 = vrot.lane.b32.xlu0 %v1142_v54, %s3481_s25 }
 0xc85   :  { %v1127_v55 = vpop.permute.xlu1 %1126 }
 0xc86   :  { %v1129_v56 = vmul.f32 %v1127_v55, %v1123_v51 }
 0xc88   :  { %1131 = vrot.lane.b32.xlu1 %v1129_v56, %s3481_s25 }
 0xc95   :  { %v1144_v57 = vpop.permute.xlu0 %1143 }
 0xc96   :  { %2840 = vmatmul.mubr.msk.f32.vlgmr.msra.gmra.mrb[6].mxu0 %vm178_vm1, %v1144_v57  ;;  %2851 = vmatmul.mubr.msk.f32.vlgmr.msra.gmra.mrb[8].mxu1 %vm178_vm1, %v1144_v57 }
 0xc97   :  { %3059 = vmatpush3.bf16.msra.mxu0 %v3719_v10  ;;  %2861 = vmatprep.mubr.msk.f32.mxu0 %vm3478_vm0, %v3479_v14 }
 0xc98   :  { %3060 = vmatprep.subr.bf16.mxu0 %v3477_v11  ;;  %3065 = vmatpush3.bf16.msra.mxu1 %v3681_v46 }
 0xc99   :  { %3066 = vmatprep.subr.bf16.mxu1 %v3477_v11  ;;  %2872 = vmatprep.mubr.msk.f32.mxu1 %vm3478_vm0, %v3479_v14 }
 0xc9b   :  { %3062 = vmatpush3.bf16.msra.mxu0 %v3722_v15 }
 0xc9c   :  { %3069 = vmatprep.subr.bf16.mxu0 %v3477_v11  ;;  %3068 = vmatpush3.bf16.msra.mxu1 %v3690_v47 }
 0xc9d   :  { %3075 = vmatprep.subr.bf16.mxu1 %v3477_v11 }
 0xcfa   :  { %v1132_v59 = vpop.permute.xlu1 %1131 }
 0xcfb   :  { %v3843_v60 = vadd.f32 %v1132_v59, %v1124_v58 }
 0xcfd   :  { %3226 = vtanh.f32 %v3843_v60 }
 0xd07   :  { %v3227_v61 = vpop.eup %3226 }
 0xd08   :  { %1137 = vrot.lane.b32.xlu1 %v3227_v61, %s3482_s1 }
 0xd69   :  { %v1283_v62 = vpop.f32.mrb[8].mxu1 }
 0xd6a   :  { %v1288_v63 = vrot.slane %v1283_v62, 4  ;;  %v2852_v0 = vpop.f32.mrb[9].mxu1 }
 0xd6c   :  { %v1290_v1 = vadd.f32 %v1288_v63, %v3653_v24 }
 0xd6e   :  { %v2576_v2 = vmul.f32 -1.442695, %v1290_v1 }
 0xd70   :  { %3228 = vpow2.f32 %v2576_v2 }
 0xd71   :  { %3230 = vtanh.f32 %v1290_v1 }
 0xd7a   :  { %v3229_v3 = vpop.eup %3228  ;;  %v1138_v4 = vpop.permute.xlu1 %1137 }
 0xd7b   :  { %v1295_v8 = vadd.f32 1.0, %v3229_v3  ;;  %v1140_v9 = vmul.f32 %v1138_v4, %v1123_v51  ;;  %v3231_v13 = vpop.eup %3230 }
 0xd7d   :  { %3232 = vrcp.f32 %v1295_v8  ;;  %1320 = vrot.lane.b32.xlu1 %v1140_v9, %s3481_s25 }
 0xd87   :  { %v3233_v16 = vpop.eup %3232 }
 0xd88   :  { %v1298_v17 = vsel %vm3656_vm4, %v3231_v13, %v3233_v16 }
 0xd89   :  { %1304 = vrot.lane.b32.xlu0 %v1298_v17, %s3482_s1  ;;  %v1302_v6 = vmul.f32 %v1300_v22, %v1298_v17 }
 0xdef   :  { %v1321_v19 = vpop.permute.xlu1 %1320 }
 0xdf0   :  { %2862 = vmatmul.mubr.msk.f32.vlgmr.msra.gmra.mrb[6].mxu0 %vm178_vm1, %v1321_v19 }
 0xdf1   :  { %3071 = vmatpush3.bf16.msra.mxu0 %v3633_v12  ;;  %2883 = vmatprep.mubr.msk.f32.mxu0 %vm3478_vm0, %v3479_v14 }
 0xdf2   :  { %3072 = vmatprep.subr.bf16.mxu0 %v3477_v11 }
 0xdf5   :  { %3074 = vmatpush3.bf16.msra.mxu0 %v3641_v18 }
 0xdf6   :  { %3081 = vmatprep.subr.bf16.mxu0 %v3477_v11 }
 0xdfb   :  { %v1305_v20 = vpop.permute.xlu0 %1304 }
 0xdfc   :  { %v1307_v21 = vmul.f32 %v1305_v20, %v1298_v17 }
 0xdfe   :  { %1309 = vrot.lane.b32.xlu0 %v1307_v21, %s3481_s25 }
 0xe70   :  { %v1310_v23 = vpop.permute.xlu0 %1309 }
 0xe71   :  { %v3861_v25 = vadd.f32 %v1310_v23, %v1302_v6 }
 0xe73   :  { %3234 = vtanh.f32 %v3861_v25  ;;  %v1579_v63 = vrot.slane %v3861_v25, 7 }
 0xe7d   :  { %v3235_v26 = vpop.eup %3234 }
 0xe7e   :  { %1315 = vrot.lane.b32.xlu0 %v3235_v26, %s3482_s1 }
 0xec3   :  { %v1390_v27 = vpop.f32.mrb[6].mxu0 }
 0xec4   :  { %v3132_v28 = vadd.f32 %v1390_v27, %v3623_v5  ;;  %v2863_v29 = vpop.f32.mrb[7].mxu0 }
 0xec6   :  { %v2578_v30 = vmul.f32 -1.442695, %v3132_v28 }
 0xec8   :  { %3236 = vpow2.f32 %v2578_v30 }
 0xec9   :  { %3238 = vtanh.f32 %v3132_v28 }
 0xed2   :  { %v3237_v7 = vpop.eup %3236 }
 0xed3   :  { %v1399_v31 = vadd.f32 1.0, %v3237_v7  ;;  %v3239_v32 = vpop.eup %3238 }
 0xed5   :  { %3240 = vrcp.f32 %v1399_v31 }
 0xedf   :  { %v3241_v34 = vpop.eup %3240 }
 0xee0   :  { %v1402_v35 = vsel %vm3656_vm4, %v3239_v32, %v3241_v34 }
 0xee1   :  { %1405 = vrot.lane.b32.xlu1 %v1402_v35, %s3482_s1  ;;  %v1403_v42 = vmul.f32 %v1402_v35, %v3843_v60 }
 0xef0   :  { %v1316_v36 = vpop.permute.xlu0 %1315 }
 0xef1   :  { %v1318_v37 = vmul.f32 %v1316_v36, %v1298_v17 }
 0xef3   :  { %v1421_v38 = vrot.slane %v1318_v37, 4 }
 0xef5   :  { %1422 = vrot.lane.b32.xlu0 %v1421_v38, %s3481_s25 }
 0xf53   :  { %v1406_v39 = vpop.permute.xlu1 %1405 }
 0xf54   :  { %v1408_v40 = vmul.f32 %v1406_v39, %v1402_v35 }
 0xf56   :  { %1410 = vrot.lane.b32.xlu1 %v1408_v40, %s3481_s25 }
 0xf67   :  { %v1423_v41 = vpop.permute.xlu0 %1422 }
 0xf68   :  { %2873 = vmatmul.mubr.msk.f32.vlgmr.msra.gmra.mrb[10].mxu1 %vm178_vm1, %v1423_v41  ;;  %2884 = vmatmul.mubr.msk.f32.vlgmr.msra.gmra.mrb[8].mxu0 %vm178_vm1, %v1423_v41 }
 0xf69   :  { %3077 = vmatpush3.bf16.msra.mxu1 %v3719_v10  ;;  %2894 = vmatprep.mubr.msk.f32.mxu1 %vm3478_vm0, %v3479_v14 }
 0xf6a   :  { %3078 = vmatprep.subr.bf16.mxu1 %v3477_v11  ;;  %3083 = vmatpush3.bf16.msra.mxu0 %v3681_v46 }
 0xf6b   :  { %3084 = vmatprep.subr.bf16.mxu0 %v3477_v11  ;;  %2905 = vmatprep.mubr.msk.f32.mxu0 %vm3478_vm0, %v3479_v14 }
 0xf6d   :  { %3080 = vmatpush3.bf16.msra.mxu1 %v3722_v15 }
 0xf6e   :  { %3087 = vmatprep.subr.bf16.mxu1 %v3477_v11  ;;  %3086 = vmatpush3.bf16.msra.mxu0 %v3690_v47 }
 0xf6f   :  { %3093 = vmatprep.subr.bf16.mxu0 %v3477_v11 }
 0xfc8   :  { %v1411_v43 = vpop.permute.xlu1 %1410 }
 0xfc9   :  { %v3886_v44 = vadd.f32 %v1411_v43, %v1403_v42 }
 0xfcb   :  { %3242 = vtanh.f32 %v3886_v44 }
 0xfd5   :  { %v3243_v45 = vpop.eup %3242 }
 0xfd6   :  { %1416 = vrot.lane.b32.xlu1 %v3243_v45, %s3482_s1 }
0x103b   :  { %v1562_v48 = vpop.f32.mrb[8].mxu0 }
0x103c   :  { %v1567_v49 = vrot.slane %v1562_v48, 3  ;;  %v2885_v50 = vpop.f32.mrb[9].mxu0 }
0x103e   :  { %v1569_v51 = vadd.f32 %v1567_v49, %v3653_v24 }
0x1040   :  { %v2581_v52 = vmul.f32 -1.442695, %v1569_v51 }
0x1042   :  { %3244 = vpow2.f32 %v2581_v52 }
0x1043   :  { %3246 = vtanh.f32 %v1569_v51 }
0x1048   :  { %v1417_v53 = vpop.permute.xlu1 %1416 }
0x1049   :  { %v1419_v54 = vmul.f32 %v1417_v53, %v1402_v35 }
0x104b   :  { %1599 = vrot.lane.b32.xlu1 %v1419_v54, %s3481_s25 }
0x104c   :  { %v3245_v55 = vpop.eup %3244 }
0x104d   :  { %v1574_v56 = vadd.f32 1.0, %v3245_v55  ;;  %v3247_v57 = vpop.eup %3246 }
0x104f   :  { %3248 = vrcp.f32 %v1574_v56 }
0x1059   :  { %v3249_v58 = vpop.eup %3248 }
0x105a   :  { %v1577_v59 = vsel %vm3656_vm4, %v3247_v57, %v3249_v58 }
0x105b   :  { %1583 = vrot.lane.b32.xlu0 %v1577_v59, %s3482_s1  ;;  %v1581_v0 = vmul.f32 %v1579_v63, %v1577_v59 }
0x10bd   :  { %v1600_v60 = vpop.permute.xlu1 %1599 }
0x10be   :  { %2895 = vmatmul.mubr.msk.f32.vlgmr.msra.gmra.mrb[10].mxu1 %vm178_vm1, %v1600_v60 }
0x10bf   :  { %3089 = vmatpush3.bf16.msra.mxu1 %v3633_v12  ;;  %2916 = vmatprep.mubr.msk.f32.mxu1 %vm3478_vm0, %v3479_v14 }
0x10c0   :  { %3090 = vmatprep.subr.bf16.mxu1 %v3477_v11 }
0x10c3   :  { %3092 = vmatpush3.bf16.msra.mxu1 %v3641_v18 }
0x10c4   :  { %3099 = vmatprep.subr.bf16.mxu1 %v3477_v11 }
0x10cd   :  { %v1584_v61 = vpop.permute.xlu0 %1583 }
0x10ce   :  { %v1586_v62 = vmul.f32 %v1584_v61, %v1577_v59 }
0x10d0   :  { %1588 = vrot.lane.b32.xlu0 %v1586_v62, %s3481_s25 }
0x1142   :  { %v1589_v1 = vpop.permute.xlu0 %1588 }
0x1143   :  { %v3904_v2 = vadd.f32 %v1589_v1, %v1581_v0 }
0x1145   :  { %3250 = vtanh.f32 %v3904_v2  ;;  %v1858_v49 = vrot.slane %v3904_v2, 7 }
0x114f   :  { %v3251_v3 = vpop.eup %3250 }
0x1150   :  { %1594 = vrot.lane.b32.xlu0 %v3251_v3, %s3482_s1 }
0x1191   :  { %v1669_v4 = vpop.f32.mrb[10].mxu1 }
0x1192   :  { %v3133_v8 = vadd.f32 %v1669_v4, %v3623_v5  ;;  %v2896_v9 = vpop.f32.mrb[11].mxu1 }
0x1194   :  { %v2583_v13 = vmul.f32 -1.442695, %v3133_v8 }
0x1196   :  { %3252 = vpow2.f32 %v2583_v13 }
0x1197   :  { %3254 = vtanh.f32 %v3133_v8 }
0x11a0   :  { %v3253_v16 = vpop.eup %3252 }
0x11a1   :  { %v1678_v17 = vadd.f32 1.0, %v3253_v16  ;;  %v3255_v19 = vpop.eup %3254 }
0x11a3   :  { %3256 = vrcp.f32 %v1678_v17 }
0x11ad   :  { %v3257_v20 = vpop.eup %3256 }
0x11ae   :  { %v1681_v21 = vsel %vm3656_vm4, %v3255_v19, %v3257_v20 }
0x11af   :  { %1684 = vrot.lane.b32.xlu1 %v1681_v21, %s3482_s1  ;;  %v1682_v28 = vmul.f32 %v1681_v21, %v3886_v44 }
0x11c2   :  { %v1595_v22 = vpop.permute.xlu0 %1594 }
0x11c3   :  { %v1597_v6 = vmul.f32 %v1595_v22, %v1577_v59 }
0x11c5   :  { %v1700_v23 = vrot.slane %v1597_v6, 5 }
0x11c7   :  { %1701 = vrot.lane.b32.xlu0 %v1700_v23, %s3481_s25 }
0x1221   :  { %v1685_v25 = vpop.permute.xlu1 %1684 }
0x1222   :  { %v1687_v26 = vmul.f32 %v1685_v25, %v1681_v21 }
0x1224   :  { %1689 = vrot.lane.b32.xlu1 %v1687_v26, %s3481_s25 }
0x1239   :  { %v1702_v27 = vpop.permute.xlu0 %1701 }
0x123a   :  { %2906 = vmatmul.mubr.msk.f32.vlgmr.msra.gmra.mrb[10].mxu0 %vm178_vm1, %v1702_v27  ;;  %2917 = vmatmul.mubr.msk.f32.vlgmr.msra.gmra.mrb[12].mxu1 %vm178_vm1, %v1702_v27 }
0x123b   :  { %3095 = vmatpush3.bf16.msra.mxu0 %v3719_v10  ;;  %2927 = vmatprep.mubr.msk.f32.mxu0 %vm3478_vm0, %v3479_v14 }
0x123c   :  { %3096 = vmatprep.subr.bf16.mxu0 %v3477_v11  ;;  %3101 = vmatpush3.bf16.msra.mxu1 %v3681_v46 }
0x123d   :  { %3102 = vmatprep.subr.bf16.mxu1 %v3477_v11  ;;  %2938 = vmatprep.mubr.msk.f32.mxu1 %vm3478_vm0, %v3479_v14 }
0x123f   :  { %3098 = vmatpush3.bf16.msra.mxu0 %v3722_v15 }
0x1240   :  { %3105 = vmatprep.subr.bf16.mxu0 %v3477_v11  ;;  %3104 = vmatpush3.bf16.msra.mxu1 %v3690_v47 }
0x1241   :  { %3111 = vmatprep.subr.bf16.mxu1 %v3477_v11 }
0x1296   :  { %v1690_v29 = vpop.permute.xlu1 %1689 }
0x1297   :  { %v3929_v30 = vadd.f32 %v1690_v29, %v1682_v28 }
0x1299   :  { %3258 = vtanh.f32 %v3929_v30 }
0x12a3   :  { %v3259_v7 = vpop.eup %3258 }
0x12a4   :  { %1695 = vrot.lane.b32.xlu1 %v3259_v7, %s3482_s1 }
0x130d   :  { %v1841_v31 = vpop.f32.mrb[12].mxu1 }
0x130e   :  { %v1846_v32 = vrot.slane %v1841_v31, 2  ;;  %v2918_v34 = vpop.f32.mrb[13].mxu1 }
0x1310   :  { %v1848_v35 = vadd.f32 %v1846_v32, %v3653_v24 }
0x1312   :  { %v2586_v36 = vmul.f32 -1.442695, %v1848_v35 }
0x1314   :  { %3260 = vpow2.f32 %v2586_v36 }
0x1315   :  { %3262 = vtanh.f32 %v1848_v35 }
0x1316   :  { %v1696_v37 = vpop.permute.xlu1 %1695 }
0x1317   :  { %v1698_v38 = vmul.f32 %v1696_v37, %v1681_v21 }
0x1319   :  { %1878 = vrot.lane.b32.xlu1 %v1698_v38, %s3481_s25 }
0x131e   :  { %v3261_v39 = vpop.eup %3260 }
0x131f   :  { %v1853_v40 = vadd.f32 1.0, %v3261_v39  ;;  %v3263_v41 = vpop.eup %3262 }
0x1321   :  { %3264 = vrcp.f32 %v1853_v40 }
0x132b   :  { %v3265_v42 = vpop.eup %3264 }
0x132c   :  { %v1856_v43 = vsel %vm3656_vm4, %v3263_v41, %v3265_v42 }
0x132d   :  { %1862 = vrot.lane.b32.xlu0 %v1856_v43, %s3482_s1  ;;  %v1860_v50 = vmul.f32 %v1858_v49, %v1856_v43 }
0x138b   :  { %v1879_v44 = vpop.permute.xlu1 %1878 }
0x138c   :  { %2928 = vmatmul.mubr.msk.f32.vlgmr.msra.gmra.mrb[10].mxu0 %vm178_vm1, %v1879_v44 }
0x138d   :  { %3107 = vmatpush3.bf16.msra.mxu0 %v3633_v12  ;;  %2949 = vmatprep.mubr.msk.f32.mxu0 %vm3478_vm0, %v3479_v14 }
0x138e   :  { %3108 = vmatprep.subr.bf16.mxu0 %v3477_v11 }
0x1391   :  { %3110 = vmatpush3.bf16.msra.mxu0 %v3641_v18 }
0x1392   :  { %3117 = vmatprep.subr.bf16.mxu0 %v3477_v11 }
0x139f   :  { %v1863_v45 = vpop.permute.xlu0 %1862 }
0x13a0   :  { %v1865_v48 = vmul.f32 %v1863_v45, %v1856_v43 }
0x13a2   :  { %1867 = vrot.lane.b32.xlu0 %v1865_v48, %s3481_s25 }
0x1414   :  { %v1868_v51 = vpop.permute.xlu0 %1867 }
0x1415   :  { %v3947_v52 = vadd.f32 %v1868_v51, %v1860_v50 }
0x1417   :  { %3266 = vtanh.f32 %v3947_v52  ;;  %v2137_v28 = vrot.slane %v3947_v52, 7 }
0x1421   :  { %v3267_v12 = vpop.eup %3266 }
0x1422   :  { %1873 = vrot.lane.b32.xlu0 %v3267_v12, %s3482_s1 }
0x145f   :  { %v1948_v53 = vpop.f32.mrb[10].mxu0 }
0x1460   :  { %v3134_v18 = vadd.f32 %v1948_v53, %v3623_v5  ;;  %v2929_v54 = vpop.f32.mrb[11].mxu0 }
0x1462   :  { %v2588_v55 = vmul.f32 -1.442695, %v3134_v18 }
0x1464   :  { %3268 = vpow2.f32 %v2588_v55 }
0x1465   :  { %3270 = vtanh.f32 %v3134_v18 }
0x146e   :  { %v3269_v56 = vpop.eup %3268 }
0x146f   :  { %v1957_v57 = vadd.f32 1.0, %v3269_v56  ;;  %v3271_v58 = vpop.eup %3270 }
0x1471   :  { %3272 = vrcp.f32 %v1957_v57 }
0x147b   :  { %v3273_v59 = vpop.eup %3272 }
0x147c   :  { %v1960_v60 = vsel %vm3656_vm4, %v3271_v58, %v3273_v59 }
0x147d   :  { %1963 = vrot.lane.b32.xlu1 %v1960_v60, %s3482_s1  ;;  %v1961_v3 = vmul.f32 %v1960_v60, %v3929_v30 }
0x1494   :  { %v1874_v61 = vpop.permute.xlu0 %1873 }
0x1495   :  { %v1876_v62 = vmul.f32 %v1874_v61, %v1856_v43 }
0x1497   :  { %v1979_v63 = vrot.slane %v1876_v62, 6 }
0x1499   :  { %1980 = vrot.lane.b32.xlu0 %v1979_v63, %s3481_s25 }
0x14ef   :  { %v1964_v0 = vpop.permute.xlu1 %1963 }
0x14f0   :  { %v1966_v1 = vmul.f32 %v1964_v0, %v1960_v60 }
0x14f2   :  { %1968 = vrot.lane.b32.xlu1 %v1966_v1, %s3481_s25 }
0x150b   :  { %v1981_v2 = vpop.permute.xlu0 %1980 }
0x150c   :  { %2939 = vmatmul.mubr.msk.f32.vlgmr.msra.gmra.mrb[14].mxu1 %vm178_vm1, %v1981_v2  ;;  %2950 = vmatmul.mubr.msk.f32.vlgmr.msra.gmra.mrb[12].mxu0 %vm178_vm1, %v1981_v2 }
0x150d   :  { %3113 = vmatpush3.bf16.msra.mxu1 %v3719_v10  ;;  %2960 = vmatprep.mubr.msk.f32.mxu1 %vm3478_vm0, %v3479_v14 }
0x150e   :  { %3114 = vmatprep.subr.bf16.mxu1 %v3477_v11  ;;  %3119 = vmatpush3.bf16.msra.mxu0 %v3681_v46 }
0x150f   :  { %3120 = vmatprep.subr.bf16.mxu0 %v3477_v11  ;;  %2971 = vmatprep.mubr.msk.f32.mxu0 %vm3478_vm0, %v3479_v14 }
0x1511   :  { %3116 = vmatpush3.bf16.msra.mxu1 %v3722_v15 }
0x1512   :  { %3122 = vmatpush3.bf16.msra.mxu0 %v3690_v47 }
0x1513   :  { %3123 = vmatprep.subr.bf16.mxu0 %v3477_v11 }
0x1564   :  { %v1969_v4 = vpop.permute.xlu1 %1968 }
0x1565   :  { %v1971_v8 = vadd.f32 %v1969_v4, %v1961_v3 }
0x1567   :  { %3274 = vtanh.f32 %v1971_v8 }
0x1571   :  { %v3275_v9 = vpop.eup %3274 }
0x1572   :  { %1974 = vrot.lane.b32.xlu1 %v3275_v9, %s3482_s1 }
0x15df   :  { %v2120_v46 = vpop.f32.mrb[12].mxu0 }
0x15e0   :  { %v2125_v13 = vrot.slane %v2120_v46, 1  ;;  %v2951_v16 = vpop.f32.mrb[13].mxu0 }
0x15e2   :  { %v2127_v17 = vadd.f32 %v2125_v13, %v3653_v24 }
0x15e4   :  { %v2591_v19 = vmul.f32 -1.442695, %v2127_v17  ;;  %v1975_v20 = vpop.permute.xlu1 %1974 }
0x15e5   :  { %v1977_v21 = vmul.f32 %v1975_v20, %v1960_v60 }
0x15e6   :  { %3276 = vpow2.f32 %v2591_v19 }
0x15e7   :  { %2157 = vrot.lane.b32.xlu1 %v1977_v21, %s3481_s25  ;;  %3278 = vtanh.f32 %v2127_v17 }
0x15f0   :  { %v3277_v47 = vpop.eup %3276 }
0x15f1   :  { %v2132_v22 = vadd.f32 1.0, %v3277_v47  ;;  %v3279_v6 = vpop.eup %3278 }
0x15f3   :  { %3280 = vrcp.f32 %v2132_v22 }
0x15fd   :  { %v3281_v23 = vpop.eup %3280 }
0x15fe   :  { %v2135_v25 = vsel %vm3656_vm4, %v3279_v6, %v3281_v23 }
0x15ff   :  { %2141 = vrot.lane.b32.xlu0 %v2135_v25, %s3482_s1  ;;  %v2139_v29 = vmul.f32 %v2137_v28, %v2135_v25 }
0x1659   :  { %v2158_v26 = vpop.permute.xlu1 %2157 }
0x165a   :  { %2961 = vmatmul.mubr.msk.f32.vlgmr.msra.gmra.mrb[14].mxu1 %vm178_vm1, %v2158_v26 }
0x1671   :  { %v2142_v24 = vpop.permute.xlu0 %2141 }
0x1672   :  { %v2144_v27 = vmul.f32 %v2142_v24, %v2135_v25 }
0x1674   :  { %2146 = vrot.lane.b32.xlu0 %v2144_v27, %s3481_s25 }
0x16e6   :  { %v2147_v30 = vpop.permute.xlu0 %2146 }
0x16e7   :  { %v3980_v7 = vadd.f32 %v2147_v30, %v2139_v29 }
0x16e9   :  { %3282 = vtanh.f32 %v3980_v7 }
0x16f3   :  { %v3283_v31 = vpop.eup %3282 }
0x16f4   :  { %2152 = vrot.lane.b32.xlu0 %v3283_v31, %s3482_s1 }
0x172d   :  { %v2227_v32 = vpop.f32.mrb[14].mxu1 }
0x172e   :  { %v3135_v34 = vadd.f32 %v2227_v32, %v3623_v5  ;;  %v2962_v35 = vpop.f32.mrb[15].mxu1 }
0x1730   :  { %v2593_v36 = vmul.f32 -1.442695, %v3135_v34 }
0x1732   :  { %3284 = vpow2.f32 %v2593_v36 }
0x1733   :  { %3286 = vtanh.f32 %v3135_v34 }
0x173c   :  { %v3285_v37 = vpop.eup %3284 }
0x173d   :  { %v2236_v38 = vadd.f32 1.0, %v3285_v37  ;;  %v3287_v39 = vpop.eup %3286 }
0x173f   :  { %3288 = vrcp.f32 %v2236_v38 }
0x1749   :  { %v3289_v40 = vpop.eup %3288 }
0x174a   :  { %v2239_v41 = vsel %vm3656_vm4, %v3287_v39, %v3289_v40 }
0x174b   :  { %2242 = vrot.lane.b32.xlu1 %v2239_v41, %s3482_s1  ;;  %v2240_v50 = vmul.f32 %v2239_v41, %v1971_v8 }
0x1766   :  { %v2153_v42 = vpop.permute.xlu0 %2152 }
0x1767   :  { %v2155_v43 = vmul.f32 %v2153_v42, %v2135_v25 }
0x1769   :  { %v2258_v44 = vrot.slane %v2155_v43, 7 }
0x176b   :  { %2259 = vrot.lane.b32.xlu0 %v2258_v44, %s3481_s25 }
0x17bd   :  { %v2243_v45 = vpop.permute.xlu1 %2242 }
0x17be   :  { %v2245_v48 = vmul.f32 %v2243_v45, %v2239_v41 }
0x17c0   :  { %2247 = vrot.lane.b32.xlu1 %v2245_v48, %s3481_s25 }
0x17dd   :  { %v2260_v49 = vpop.permute.xlu0 %2259 }
0x17de   :  { %2972 = vmatmul.mubr.msk.f32.vlgmr.msra.gmra.mrb[14].mxu0 %vm178_vm1, %v2260_v49 }
0x17df   :  { %3125 = vmatpush3.bf16.msra.mxu0 %v3719_v10  ;;  %2982 = vmatprep.mubr.msk.f32.mxu0 %vm3478_vm0, %v3479_v14 }
0x17e0   :  { %3126 = vmatprep.subr.bf16.mxu0 %v3477_v11 }
0x17e3   :  { %3128 = vmatpush3.bf16.msra.mxu0 %v3722_v15 }
0x1832   :  { %v2248_v51 = vpop.permute.xlu1 %2247 }
0x1833   :  { %v2250_v52 = vadd.f32 %v2248_v51, %v2240_v50 }
0x1835   :  { %3290 = vtanh.f32 %v2250_v52 }
0x183f   :  { %v3291_v12 = vpop.eup %3290 }
0x1840   :  { %2253 = vrot.lane.b32.xlu1 %v3291_v12, %s3482_s1 }
0x18b2   :  { %v2254_v53 = vpop.permute.xlu1 %2253 }
0x18b3   :  { %v2256_v18 = vmul.f32 %v2254_v53, %v2239_v41 }
0x18b5   :  { %2334 = vrot.lane.b32.xlu1 %v2256_v18, %s3481_s25 }
0x1927   :  { %v2335_v54 = vpop.permute.xlu1 %2334 }
0x1928   :  { %2983 = vmatmul.mubr.msk.f32.vlgmr.msra.gmra.mrb[14].mxu0 %vm178_vm1, %v2335_v54 }
0x19fb   :  { %v2404_v10 = vpop.f32.mrb[14].mxu0 }
0x19fc   :  { %v3136_v14 = vadd.f32 %v2404_v10, %v3623_v5  ;;  %v2984_v11 = vpop.f32.mrb[15].mxu0  ;;  %v2597_v5 = vld [vmem:[%s4070_s9] ss:$0 sm:$0xff]  ;;  %s3485_s9 = smov [#allocation13]  }
0x19fd   :  { %s2501_s22 = sshll.u32 %s3485_s9, 4  ;;  %s2502_s22 = int_to_ptr.vmem [resolvable:$true] %s2501_s22 }
0x19fe   :  { %v2596_v55 = vmul.f32 -1.442695, %v3136_v14  ;;  %s3392_s8 = scalar_lea.vmem %s2502_s22, 32  ;;  %p3397_p5 = scmp.lt.s32.totalorder %s2502_s22, %s2502_s22 }
0x19ff   :  { %p3393_p4 = scmp.ne.s32.totalorder %s2502_s22, %s3392_s8  ;;  %p3398_p6 = scmp.lt.s32.totalorder %s3392_s8, %s3392_s8 }
0x1a00   :  { %3292 = vpow2.f32 %v2596_v55 }
0x1a01   :  { %3294 = vtanh.f32 %v3136_v14  ;;  %p3399_p7 = por %p3398_p6, %p3397_p5 }
0x1a03   :  { %p3400_p8 = pnand %p3399_p7, %p3393_p4 }
0x1a0a   :  { %v3293_v15 = vpop.eup %3292 }
0x1a0b   :  { %v2413_v56 = vadd.f32 1.0, %v3293_v15  ;;  %v3295_v57 = vpop.eup %3294 }
0x1a0d   :  { %3296 = vrcp.f32 %v2413_v56 }
0x1a17   :  { %v3297_v58 = vpop.eup %3296 }
0x1a18   :  { %v2416_v59 = vsel %vm3656_vm4, %v3295_v57, %v3297_v58 }
0x1a19   :  { %2419 = vrot.lane.b32.xlu0 %v2416_v59, %s3482_s1  ;;  %v2417_v62 = vmul.f32 %v2416_v59, %v2250_v52 }
0x1a8b   :  { %v2420_v60 = vpop.permute.xlu0 %2419 }
0x1a8c   :  { %v2422_v61 = vmul.f32 %v2420_v60, %v2416_v59 }
0x1a8e   :  { %2424 = vrot.lane.b32.xlu1 %v2422_v61, %s3481_s25 }
0x1a92   :  { %2463 = vrot.lane.b32.xlu1 %v2597_v5, %s3484_s21 }
0x1b00   :  { %v2425_v63 = vpop.permute.xlu1 %2424 }
0x1b01   :  { %v2427_v0 = vadd.f32 %v2425_v63, %v2417_v62 }
0x1b03   :  { %3298 = vtanh.f32 %v2427_v0 }
0x1b04   :  { %v2464_v2 = vpop.permute.xlu1 %2463 }
0x1b0d   :  { %v3299_v1 = vpop.eup %3298 }
0x1b0e   :  { %2430 = vrot.lane.b32.xlu0 %v3299_v1, %s3482_s1 }
0x1b80   :  { %v2431_v33 = vpop.permute.xlu0 %2430 }
0x1b81   :  { %v2433_v3 = vmul.f32 %v2431_v33, %v2416_v59 }
0x1b83   :  { %v2466_v4 = vmul.f32 %v2464_v2, %v2433_v3 }
0x1b85   :  { %2468 = vrot.lane.b32.xlu0 %v2466_v4, %s3481_s25 }
0x1b89   :  { %2447 = vrot.lane.b32.xlu0 %v3980_v7, %s3484_s21 }
0x1b8d   :  { %2452 = vrot.lane.b32.xlu0 %v2427_v0, %s3484_s21 }
0x1b91   :  { %2434 = vrot.lane.b32.xlu0 %v2155_v43, %s3481_s25 }
0x1b95   :  { %2440 = vrot.lane.b32.xlu0 %v2433_v3, %s3481_s25 }
0x1bf7   :  { %v2469_v8 = vpop.permute.xlu0 %2468 }
0x1bf8   :  { %v2471_v9 = vsel %vm2444_vm5, %v2469_v8, 0.0 }
0x1bf9   :  { %2472 = vadd.xlane.f32.xlu1 %v2471_v9 }
0x1bfb   :  { %v2448_v46 = vpop.permute.xlu0 %2447 }
0x1bfc   :  { %2450 = vst.msk [vmem:[#allocation13 - $0x7] sm:$0x80] %vm2437_vm6, %v2448_v46 }
0x1bff   :  { %v2453_v13 = vpop.permute.xlu0 %2452 }
0x1c00   :  { %2456 = vst.msk [vmem:[#allocation13 + $0x1] sm:$0x1] %vm2444_vm5, %v2453_v13 }
0x1c03   :  { %v2435_v16 = vpop.permute.xlu0 %2434 }
0x1c04   :  { %2438 = vst.msk [vmem:[#allocation12 - $0x7] sm:$0x80] %vm2437_vm6, %v2435_v16 }
0x1c07   :  { %v2441_v17 = vpop.permute.xlu0 %2440 }
0x1c08   :  { %2445 = vst.msk [vmem:[#allocation12 + $0x1] sm:$0x1] %vm2444_vm5, %v2441_v17 }
0x1c09   :  { %3403 = shalt.err (!%p3400_p8)
}
0x1c0a   :  { %s3404_s27 = scalar_lea.hbm %s4073_s12, 32 }
0x1c0b   :  { %p3405_p9 = scmp.ne.s32.totalorder %s4073_s12, %s3404_s27  ;;  %p3408_p10 = scmp.lt.u32.totalorder %s3404_s27, %s4073_s12 }
0x1c0d   :  { %p3410_p11 = pnand %p3408_p10, %p3405_p9 }
0x1c0f   :  { %3413 = shalt.err (!%p3410_p11)
}
0x1c10   :  { %2507 = dma.vmem_to_hbm [thread:$0]  %s2502_s22, 32, %s4073_s12, [#allocation14], %s3474_s4, %s3474_s4, %s3475_s28  }
0x1c11   :  { %s3414_s30 = scalar_lea.vmem %s4012_s6, 32  ;;  %p3419_p13 = scmp.lt.s32.totalorder %s4012_s6, %s4012_s6 }
0x1c12   :  { %p3415_p12 = scmp.ne.s32.totalorder %s4012_s6, %s3414_s30  ;;  %p3420_p0 = scmp.lt.s32.totalorder %s3414_s30, %s3414_s30 }
0x1c14   :  { %p3421_p1 = por %p3420_p0, %p3419_p13 }
0x1c16   :  { %p3422_p2 = pnand %p3421_p1, %p3415_p12 }
0x1c18   :  { %3425 = shalt.err (!%p3422_p2)
}
0x1c19   :  { %s3426_s16 = scalar_lea.hbm %s4072_s11, 32 }
0x1c1a   :  { %p3427_p3 = scmp.ne.s32.totalorder %s4072_s11, %s3426_s16  ;;  %p3430_p4 = scmp.lt.u32.totalorder %s3426_s16, %s4072_s11 }
0x1c1c   :  { %p3432_p5 = pnand %p3430_p4, %p3427_p3 }
0x1c1e   :  { %3435 = shalt.err (!%p3432_p5)
}
0x1c1f   :  { %2495 = dma.vmem_to_hbm [thread:$0]  %s4012_s6, 32, %s4072_s11, [#allocation8], %s3474_s4, %s3474_s4, %s3475_s28   ;;  %v2474_v19 = vld [vmem:[#allocation5] sm:$0x1]  ;;  %vm2482_vm7 = vcmask 0  }
0x1c20   :  { %s3487_s7 = smov [#allocation15]  }
0x1c21   :  { %s2514_s20 = sshll.u32 %s3487_s7, 4  ;;  %s2515_s20 = int_to_ptr.vmem [resolvable:$true] %s2514_s20 }
0x1c22   :  { %s3436_s21 = scalar_lea.vmem %s2515_s20, 16  ;;  %s3440_s9 = scalar_lea.vmem %s2515_s20, 32 }
0x1c23   :  { %p3437_p6 = scmp.ne.s32.totalorder %s2515_s20, %s3436_s21  ;;  %p3441_p7 = scmp.lt.s32.totalorder %s2515_s20, %s2515_s20 }
0x1c24   :  { %p3442_p8 = scmp.lt.s32.totalorder %s3440_s9, %s3436_s21 }
0x1c26   :  { %p3443_p9 = por %p3442_p8, %p3441_p7 }
0x1c28   :  { %p3444_p10 = pnand %p3443_p9, %p3437_p6 }
0x1c86   :  { %v2473_v20 = vpop.xlane.xlu1 %2472 }
0x1c87   :  { %v2475_v21 = vadd.f32 %v2474_v19, %v2473_v20 }
0x1c89   :  { %v2598_v47 = vmul.f32 -1.442695, %v2475_v21 }
0x1c8b   :  { %3300 = vpow2.f32 %v2598_v47 }
0x1c95   :  { %v3301_v22 = vpop.eup %3300 }
0x1c96   :  { %v2479_v6 = vadd.f32 1.0, %v3301_v22 }
0x1c98   :  { %3302 = vrcp.f32 %v2479_v6 }
0x1ca2   :  { %v3303_v23 = vpop.eup %3302 }
0x1ca3   :  { %2483 = vst.msk [vmem:[#allocation15] sm:$0x1] %vm2482_vm7, %v3303_v23 }
0x1ca4   :  { %3447 = shalt.err (!%p3444_p10)
}
0x1ca5   :  { %s3448_s28 = scalar_lea.hbm %s4074_s13, 16 }
0x1ca6   :  { %p3449_p11 = scmp.ne.s32.totalorder %s4074_s13, %s3448_s28  ;;  %p3452_p12 = scmp.lt.u32.totalorder %s3448_s28, %s4074_s13 }
0x1ca8   :  { %p3454_p13 = pnand %p3452_p12, %p3449_p11 }
0x1caa   :  { %3457 = shalt.err (!%p3454_p13)
}
0x1cab   :  { %2517 = dma.vmem_to_hbm [thread:$0]  %s2515_s20, 16, %s4074_s13, [#allocation14]  }
0x1cac   :  { %3466 = dma.done.wait [#allocation8], 32  }
0x1cad   :  { %3467 = vsyncadd [#allocation8], 4294967264 }
0x1cae   :  { %3468 = dma.done.wait [#allocation14], 48  }
0x1caf   :  { %3469 = vsyncadd [#allocation14], 4294967248 }
0x1cb0   :  { %2527 = vsyncpa [#allocation7], 1 }
0x1cb1   :  { %2528 = vsyncpa [#allocation10], 1 }
0x1cb2   :  { %2529 = vsyncpa [#allocation8], 1 }
0x1cb3   :  { %2530 = vsyncpa [#allocation14], 1 }
0x1cb4   :  { %2531 = vsyncmov [#allocation4] }
0x1cb7   :  { %s2532_s27 = vpop.sfrf %2531 }
0x1cb8   :  { %p2599_p0 = scmp.ne.s32.totalorder %s2532_s27, 0 }
0x1cba   :  { %2536 = shalt.err (%p2599_p0)  }
0x1cbb   :  { %2538 = vsyncmov [#allocation4 + $0x1] }
0x1cbe   :  { %s2539_s0 = vpop.sfrf %2538 }
0x1cbf   :  { %p2600_p1 = scmp.ne.s32.totalorder %s2539_s0, 0 }
0x1cc1   :  { %2543 = shalt.err (%p2600_p1)  }

</bundles_post_ra>
